<compile_context>
chip_gen: v7x
topology: tpu7x:2x2x1
jax: 0.10.0
libtpu: 0.0.40
codegen_flags: <defaults>
</compile_context>

<pallas_src>
import jax
import jax.numpy as jnp
import numpy as np
from jax import lax
from jax.experimental import pallas as pl
from jax.experimental.pallas import tpu as pltpu


# ----------------------------------------------------------------------------
# Minimal stand-ins for detectron2 glue
# ----------------------------------------------------------------------------
class Instances:
    """Tiny stand-in for detectron2's Instances (only what forward() needs)."""

    def __init__(self, num):
        self._num = num

    def __len__(self):
        return self._num


# Emulates detectron2's EventStorage (get_event_storage().put_scalar).
# TODO(synk): detectron2's global EventStorage has no Pallas equivalent;
#             scalars are stashed here instead.
_EVENT_STORAGE = {}

_LANE = 128
_SUBLANE = 8
_VMEM_BUDGET = 20 * 1024 * 1024  # stay under the 32 MiB scoped default everywhere


def _round_up(x, m):
    return (x + m - 1) // m * m


def _pick_tb(B, row_bytes):
    """Instances per grid step: sublane-aligned, VMEM-budgeted, up to 64."""
    tb = min(64, _round_up(max(B, 1), _SUBLANE))
    cap = max(_SUBLANE, (_VMEM_BUDGET // max(row_bytes, 1)) // _SUBLANE * _SUBLANE)
    return max(_SUBLANE, min(tb, cap))


# ----------------------------------------------------------------------------
# mask_rcnn_loss kernel: per-instance class gather + BCE-with-logits + stats
# ----------------------------------------------------------------------------
def _mask_loss_sums(gt_classes, pred_mask_logits, gt_masks):
    """Returns (8,) f32: [sum_bce, sum_incorrect, sum_false_neg, 0, ...]."""
    B, C, H, W = pred_mask_logits.shape
    HW = H * W
    HW_pad = _round_up(HW, _LANE)
    itemsize = jnp.dtype(pred_mask_logits.dtype).itemsize
    # Per-row VMEM: lbuf double-buffer (2*it) + mask double-buffer (8) + bce acc (4).
    TB = _pick_tb(B, HW_pad * (2 * itemsize + 12))
    nsteps = -(-B // TB)
    B_pad = nsteps * TB

    logits2d = pred_mask_logits.reshape(B * C, HW)           # lane-dense rows (HBM)
    masks2d = gt_masks.reshape(B, HW).astype(jnp.float32)
    if HW_pad != HW:                                          # lane-pad spatial axis
        logits2d = jnp.pad(logits2d, ((0, 0), (0, HW_pad - HW)))
        masks2d = jnp.pad(masks2d, ((0, 0), (0, HW_pad - HW)))
    if B_pad != B:                                            # sublane-pad batch axis
        masks2d = jnp.pad(masks2d, ((0, B_pad - B), (0, 0)))
    gt_classes = gt_classes.astype(jnp.int32)

    def kernel(cls_ref, logits_hbm, masks_ref, sums_ref, lbuf, sem, acc_bce, acc_cnt):
        step = pl.program_id(0)
        slot = step % 2

        def fetch(s, dst_slot):
            # TB per-row gather DMAs, all signalling ONE per-slot semaphore.
            base = s * TB
            for t in range(TB):
                b = jnp.minimum(base + t, B - 1)              # clamp padded rows
                cls = jnp.clip(cls_ref[b], 0, C - 1)          # range-check class id
                row = b * C + cls                             # gathered class channel
                pltpu.make_async_copy(
                    logits_hbm.at[pl.ds(row, 1)],
                    lbuf.at[dst_slot, pl.ds(t, 1)],
                    sem.at[dst_slot]).start()

        def wait(dst_slot):
            # Single wait for the whole (TB, HW_pad) slab: the DMA semaphore
            # counts bytes and the slab equals the sum of the TB row copies.
            pltpu.make_async_copy(
                lbuf.at[dst_slot], lbuf.at[dst_slot], sem.at[dst_slot]).wait()

        @pl.when(step == 0)
        def _():
            acc_bce[...] = jnp.zeros_like(acc_bce)
            acc_cnt[...] = jnp.zeros_like(acc_cnt)
            fetch(0, 0)                                       # prime slot 0

        @pl.when(step + 1 < nsteps)
        def _():
            fetch(step + 1, 1 - slot)                         # prefetch next step

        wait(slot)

        x = lbuf[slot].astype(jnp.float32)                    # (TB, HW_pad) logits
        y = masks_ref[...]                                    # (TB, HW_pad) targets

        # valid = real batch row AND real (un-padded) spatial column.
        row_ids = lax.broadcasted_iota(jnp.int32, (TB, HW_pad), 0) + step * TB
        col_ids = lax.broadcasted_iota(jnp.int32, (TB, HW_pad), 1)
        valid = jnp.logical_and(row_ids < B, col_ids < HW)

        # Stable BCE-with-logits: max(x,0) - x*y + log1p(exp(-|x|))  (EUP ops).
        bce = jnp.maximum(x, 0.0) - x * y + jnp.log1p(jnp.exp(-jnp.abs(x)))
        y_bool = y > 0.5
        inc = jnp.logical_and((x > 0.0) != y_bool, valid)     # spec uses > 0.0
        fn = jnp.logical_and(inc, y_bool)

        # BCE: full-map element-wise accumulate (VPU).  inc / fn: lane-reduced
        # per step (XLU) into (TB,1) accumulators -> minimal vector-store traffic.
        acc_bce[...] = acc_bce[...] + jnp.where(valid, bce, 0.0)
        acc_cnt[0] = acc_cnt[0] + jnp.sum(
            jnp.where(inc, 1.0, 0.0), axis=-1, keepdims=True)
        acc_cnt[1] = acc_cnt[1] + jnp.sum(
            jnp.where(fn, 1.0, 0.0), axis=-1, keepdims=True)

        @pl.when(step == nsteps - 1)
        def _():
            sums_ref[0] = jnp.sum(acc_bce[...])
            sums_ref[1] = jnp.sum(acc_cnt[0])
            sums_ref[2] = jnp.sum(acc_cnt[1])
            sums_ref[3] = 0.0
            sums_ref[4] = 0.0
            sums_ref[5] = 0.0
            sums_ref[6] = 0.0
            sums_ref[7] = 0.0

    return pl.pallas_call(
        kernel,
        out_shape=jax.ShapeDtypeStruct((8,), jnp.float32),
        grid_spec=pltpu.PrefetchScalarGridSpec(
            num_scalar_prefetch=1,
            grid=(nsteps,),
            in_specs=[
                pl.BlockSpec(memory_space=pl.ANY),                   # logits stay in HBM
                pl.BlockSpec((TB, HW_pad), lambda s, cls: (s, 0)),   # gt masks, lane-dense
            ],
            out_specs=pl.BlockSpec((8,), lambda s, cls: (0,),
                                   memory_space=pltpu.SMEM),
            scratch_shapes=[
                pltpu.VMEM((2, TB, HW_pad), pred_mask_logits.dtype),  # DMA double buffer
                pltpu.SemaphoreType.DMA((2,)),                        # one sem per slot
                pltpu.VMEM((TB, HW_pad), jnp.float32),                # BCE accumulator
                pltpu.VMEM((2, TB, 1), jnp.float32),                  # inc / fn counters
            ],
        ),
        compiler_params=pltpu.CompilerParams(
            dimension_semantics=("arbitrary",)),
    )(gt_classes, logits2d, masks2d)


# ----------------------------------------------------------------------------
# mask_rcnn_inference kernel: per-instance class gather + sigmoid
# ----------------------------------------------------------------------------
def _mask_inference_probs(class_pred, pred_mask_logits):
    B, C, H, W = pred_mask_logits.shape
    HW = H * W
    if B == 0:
        return jnp.zeros((0, 1, H, W), pred_mask_logits.dtype)
    HW_pad = _round_up(HW, _LANE)
    itemsize = jnp.dtype(pred_mask_logits.dtype).itemsize
    # Per-row VMEM: lbuf double-buffer (2*it) + output double-buffer (2*it).
    TB = _pick_tb(B, HW_pad * 4 * itemsize)
    nsteps = -(-B // TB)
    B_pad = nsteps * TB

    logits2d = pred_mask_logits.reshape(B * C, HW)
    if HW_pad != HW:
        logits2d = jnp.pad(logits2d, ((0, 0), (0, HW_pad - HW)))

    def kernel(cls_ref, logits_hbm, out_ref, lbuf, sem):
        step = pl.program_id(0)
        slot = step % 2

        def fetch(s, dst_slot):
            base = s * TB
            for t in range(TB):
                b = jnp.minimum(base + t, B - 1)
                cls = jnp.clip(cls_ref[b], 0, C - 1)
                row = b * C + cls
                pltpu.make_async_copy(
                    logits_hbm.at[pl.ds(row, 1)],
                    lbuf.at[dst_slot, pl.ds(t, 1)],
                    sem.at[dst_slot]).start()

        @pl.when(step == 0)
        def _():
            fetch(0, 0)

        @pl.when(step + 1 < nsteps)
        def _():
            fetch(step + 1, 1 - slot)

        # Single slab wait for all TB row copies of this slot.
        pltpu.make_async_copy(lbuf.at[slot], lbuf.at[slot], sem.at[slot]).wait()

        x = lbuf[slot].astype(jnp.float32)                    # (TB, HW_pad)
        # sigmoid = 1 / (1 + exp(-x)); exp and approx reciprocal both run on the
        # EUP slot, off the VALU critical path.  Padded rows/cols are sliced off
        # in the wrapper.
        p = pl.reciprocal(1.0 + jnp.exp(-x), approx=True)
        out_ref[...] = p.astype(out_ref.dtype)                # full-lane stores

    probs = pl.pallas_call(
        kernel,
        out_shape=jax.ShapeDtypeStruct((B_pad, HW_pad), pred_mask_logits.dtype),
        grid_spec=pltpu.PrefetchScalarGridSpec(
            num_scalar_prefetch=1,
            grid=(nsteps,),
            in_specs=[pl.BlockSpec(memory_space=pl.ANY)],
            out_specs=pl.BlockSpec((TB, HW_pad), lambda s, cls: (s, 0)),
            scratch_shapes=[
                pltpu.VMEM((2, TB, HW_pad), pred_mask_logits.dtype),
                pltpu.SemaphoreType.DMA((2,)),
            ],
        ),
        compiler_params=pltpu.CompilerParams(
            dimension_semantics=("arbitrary",)),
    )(class_pred.astype(jnp.int32), logits2d)
    return probs[:B, :HW].reshape(B, 1, H, W)


# ----------------------------------------------------------------------------
# mask_rcnn_loss / mask_rcnn_inference (JAX+Pallas equivalents)
# ----------------------------------------------------------------------------
def mask_rcnn_loss(pred_mask_logits, instances):
    B, C, H, W = pred_mask_logits.shape
    assert H == W, "Mask prediction must be square!"
    cls_agnostic_mask = (C == 1)

    gt_classes, gt_masks = [], []
    for inst in instances:
        if len(inst) == 0:
            continue
        if not cls_agnostic_mask:
            gt_classes.append(jnp.asarray(inst.gt_classes, dtype=jnp.int32))
        # TODO(synk): detectron2 rasterizes polygon gt masks on the fly via
        # gt_masks.crop_and_resize(proposal_boxes, mask_side_len); here
        # inst.gt_masks is assumed to already be an (n, H, W) mask array.
        gt_masks.append(jnp.asarray(inst.gt_masks))

    if len(gt_masks) == 0:
        return jnp.sum(pred_mask_logits) * 0.0

    gt_masks = jnp.concatenate(gt_masks, axis=0).astype(jnp.float32)
    assert gt_masks.shape[0] == B, "instances do not match pred_mask_logits rows"
    if cls_agnostic_mask:
        gt_classes = jnp.zeros((B,), jnp.int32)
    else:
        gt_classes = jnp.concatenate(gt_classes, axis=0).astype(jnp.int32)
        assert gt_classes.shape[0] == B

    sums = _mask_loss_sums(gt_classes, pred_mask_logits, gt_masks)
    bce_sum, inc_sum, fn_sum = sums[0], sums[1], sums[2]
    # positives depend only on gt masks -> computed for free in plain JAX.
    pos_sum = jnp.sum((gt_masks > 0.5).astype(jnp.float32))
    fp_sum = inc_sum - fn_sum

    numel = float(B * H * W)
    mask_loss = bce_sum / numel
    _EVENT_STORAGE["mask_rcnn/accuracy"] = 1.0 - inc_sum / max(numel, 1.0)
    _EVENT_STORAGE["mask_rcnn/false_positive"] = fp_sum / jnp.maximum(numel - pos_sum, 1.0)
    _EVENT_STORAGE["mask_rcnn/false_negative"] = fn_sum / jnp.maximum(pos_sum, 1.0)
    return mask_loss


def mask_rcnn_inference(pred_mask_logits, pred_instances):
    B, C, H, W = pred_mask_logits.shape
    if C == 1:
        class_pred = jnp.zeros((B,), jnp.int32)
    else:
        class_pred = jnp.concatenate(
            [jnp.asarray(i.pred_classes, dtype=jnp.int32) for i in pred_instances], axis=0)
        assert class_pred.shape[0] == B

    mask_probs_pred = _mask_inference_probs(class_pred, pred_mask_logits)

    offset = 0
    for inst in pred_instances:
        n = len(inst)
        inst.pred_masks = mask_probs_pred[offset:offset + n]  # (n, 1, H, W)
        offset += n


# ----------------------------------------------------------------------------
# The module
# ----------------------------------------------------------------------------
class BaseMaskRCNNHead:
    """JAX/Pallas port of detectron2's BaseMaskRCNNHead forward semantics."""

    def __init__(self, vis_period=0):
        self.vis_period = vis_period  # base __init__ stores cfg.VIS_PERIOD only
        self.training = True

    def layers(self, x):
        # Abstract in the reference (NotImplementedError); base class has no
        # parameters.  TODO(synk): concrete subclasses add conv/deconv stacks;
        # identity here.
        return x

    def forward(self, x, instances):
        x = self.layers(x)
        if self.training:
            return {"loss_mask": mask_rcnn_loss(x, instances)}
        else:
            mask_rcnn_inference(x, instances)
            return instances


# ----------------------------------------------------------------------------
# Demo / self-check
# ----------------------------------------------------------------------------
if __name__ == "__main__":
    key = jax.random.PRNGKey(0)
    B, C, H, W = 4, 4, 16, 16  # 4 predicted masks, 4 fg classes, 16x16 masks
    ks = jax.random.split(key, 8)

    feats = jax.random.normal(ks[0], (B, C, H, W), dtype=jnp.float32)
    gt_classes_all = jax.random.randint(ks[1], (B,), 0, C, dtype=jnp.int32)
    gt_masks_all = (jax.random.uniform(ks[2], (B, H, W)) > 0.5).astype(jnp.float32)
    pred_classes_all = jax.random.randint(ks[3], (B,), 0, C, dtype=jnp.int32)

    # Two images with 2 instances each.
    inst0, inst1 = Instances(2), Instances(2)
    inst0.gt_classes, inst1.gt_classes = gt_classes_all[:2], gt_classes_all[2:]
    inst0.gt_masks, inst1.gt_masks = gt_masks_all[:2], gt_masks_all[2:]
    inst0.pred_classes, inst1.pred_classes = pred_classes_all[:2], pred_classes_all[2:]

    head = BaseMaskRCNNHead(vis_period=0)

    # --- training path ---
    head.training = True
    losses = head.forward(feats, [inst0, inst1])
    loss = jax.block_until_ready(losses["loss_mask"])

    # --- inference path ---
    head.training = False
    out_instances = head.forward(feats, [inst0, inst1])
    jax.block_until_ready(out_instances[0].pred_masks)
    jax.block_until_ready(out_instances[1].pred_masks)

    # --- reference check (plain JAX) ---
    idx = jnp.arange(B)
    g = feats[idx, gt_classes_all]  # (B, H, W)
    ref_loss = jnp.mean(
        jnp.maximum(g, 0.0) - g * gt_masks_all + jnp.log1p(jnp.exp(-jnp.abs(g))))
    assert np.allclose(np.asarray(loss), np.asarray(ref_loss), rtol=1e-5, atol=1e-5)

    gt_bool = np.asarray(gt_masks_all) > 0.5
    inc_np = (np.asarray(g) > 0.0) != gt_bool
    pos_np = gt_bool.sum()
    acc_ref = 1.0 - inc_np.sum() / max(B * H * W, 1.0)
    fp_ref = (inc_np & ~gt_bool).sum() / max(B * H * W - pos_np, 1.0)
    fn_ref = (inc_np & gt_bool).sum() / max(pos_np, 1.0)
    assert abs(float(_EVENT_STORAGE["mask_rcnn/accuracy"]) - acc_ref) < 1e-5
    assert abs(float(_EVENT_STORAGE["mask_rcnn/false_positive"]) - fp_ref) < 1e-5
    assert abs(float(_EVENT_STORAGE["mask_rcnn/false_negative"]) - fn_ref) < 1e-5

    ref_probs = np.asarray(jax.nn.sigmoid(feats[idx, pred_classes_all])[:, None])
    got_probs = np.concatenate(
        [np.asarray(out_instances[0].pred_masks),
         np.asarray(out_instances[1].pred_masks)], axis=0)
    assert got_probs.shape == (B, 1, H, W)
    # approx EUP reciprocal in the sigmoid -> slightly looser tolerance.
    assert np.allclose(got_probs, ref_probs, rtol=1e-2, atol=2e-2)

    # --- stress: multi-step prefetch, batch padding, lane (HW) padding ---
    B3, H3 = 200, 14                                   # HW=196 -> lane-padded to 256
    f3 = jax.random.normal(ks[4], (B3, C, H3, H3), dtype=jnp.float32)
    c3 = jax.random.randint(ks[5], (B3,), 0, C, dtype=jnp.int32)
    m3 = (jax.random.uniform(ks[6], (B3, H3, H3)) > 0.5).astype(jnp.float32)
    sums3 = jax.block_until_ready(_mask_loss_sums(c3, f3, m3))
    g3 = f3[jnp.arange(B3), c3]
    ref_bce3 = jnp.sum(
        jnp.maximum(g3, 0.0) - g3 * m3 + jnp.log1p(jnp.exp(-jnp.abs(g3))))
    assert np.allclose(np.asarray(sums3[0]), np.asarray(ref_bce3),
                       rtol=1e-4, atol=1e-2)
    gt3 = np.asarray(m3) > 0.5
    inc3 = (np.asarray(g3) > 0.0) != gt3
    assert abs(float(sums3[1]) - inc3.sum()) < 0.5
    assert abs(float(sums3[2]) - (inc3 & gt3).sum()) < 0.5
    probs3 = jax.block_until_ready(_mask_inference_probs(c3, f3))
    assert probs3.shape == (B3, 1, H3, H3)
    assert np.allclose(np.asarray(probs3[:, 0]),
                       np.asarray(jax.nn.sigmoid(g3)), rtol=1e-2, atol=2e-2)

    print("KERNEL_OK")
</pallas_src>

<mosaic_0001>
module attributes {stable_mosaic.version = 11 : i64} {
  func.func @kernel(%arg0: i32, %arg1: memref<4xi32, #tpu.memory_space<smem>>, %arg2: memref<16x256xf32, #tpu.memory_space<any>>, %arg3: memref<8x256xf32, #tpu.memory_space<vmem>>, %arg4: memref<8xf32, #tpu.memory_space<smem>>, %arg5: memref<2x8x256xf32, #tpu.memory_space<vmem>>, %arg6: memref<2x!tpu.dma_semaphore, #tpu.memory_space<semaphore_mem>>, %arg7: memref<8x256xf32, #tpu.memory_space<vmem>>, %arg8: memref<2x8x1xf32, #tpu.memory_space<vmem>>) attributes {dimension_semantics = [#tpu.dimension_semantics<arbitrary>], iteration_bounds = array<i64: 1>, scalar_prefetch = 1 : i64, scratch_operands = 4 : i64, tpu.core_type = #tpu.core_type<tc>, window_params = [{}, {transform_indices = @transform_1, window_bounds = array<i64: 8, 256>}, {transform_indices = @transform_2, window_bounds = array<i64: 8>}]} {
    %c2_i32 = arith.constant 2 : i32
    %c0_i32 = arith.constant 0 : i32
    %0 = arith.cmpi eq, %c2_i32, %c0_i32 : i32
    %c1_i32 = arith.constant 1 : i32
    %1 = arith.select %0, %c1_i32, %c2_i32 : i32
    %2 = arith.remsi %arg0, %1 : i32
    %c0_i32_0 = arith.constant 0 : i32
    %3 = arith.cmpi ne, %2, %c0_i32_0 : i32
    %c0_i32_1 = arith.constant 0 : i32
    %4 = arith.cmpi slt, %2, %c0_i32_1 : i32
    %c0_i32_2 = arith.constant 0 : i32
    %5 = arith.cmpi slt, %1, %c0_i32_2 : i32
    %6 = arith.xori %4, %5 : i1
    %7 = arith.andi %6, %3 : i1
    %8 = arith.addi %2, %1 : i32
    %9 = arith.select %7, %8, %2 : i32
    %c0_i32_3 = arith.constant 0 : i32
    %10 = arith.cmpi eq, %arg0, %c0_i32_3 : i32
    %11 = arith.extui %10 : i1 to i32
    %c0_i32_4 = arith.constant 0 : i32
    %12 = arith.cmpi ne, %11, %c0_i32_4 : i32
    scf.if %12 {
      %cst_42 = arith.constant 0.000000e+00 : f32
      %84 = vector.broadcast %cst_42 : f32 to vector<8x256xf32>
      %c0_43 = arith.constant 0 : index
      %c0_44 = arith.constant 0 : index
      %85 = vector.load %arg7[%c0_43, %c0_44] : memref<8x256xf32, #tpu.memory_space<vmem>>, vector<8x256xf32>
      tpu.vector_store %arg7[%c0_43, %c0_44], %84 {strides = array<i32>} : memref<8x256xf32, #tpu.memory_space<vmem>>, vector<8x256xf32>,
      %cst_45 = arith.constant 0.000000e+00 : f32
      %86 = vector.broadcast %cst_45 : f32 to vector<2x8x1xf32>
      %c0_46 = arith.constant 0 : index
      %c0_47 = arith.constant 0 : index
      %c0_48 = arith.constant 0 : index
      %87 = vector.load %arg8[%c0_46, %c0_47, %c0_48] : memref<2x8x1xf32, #tpu.memory_space<vmem>>, vector<2x8x1xf32>
      tpu.vector_store %arg8[%c0_46, %c0_47, %c0_48], %86 {strides = array<i32>} : memref<2x8x1xf32, #tpu.memory_space<vmem>>, vector<2x8x1xf32>,
      %c0_i32_49 = arith.constant 0 : i32
      %c3_i32 = arith.constant 3 : i32
      %88 = arith.minsi %c0_i32_49, %c3_i32 : i32
      %89 = arith.index_cast %88 : i32 to index
      %90 = memref.load %arg1[%89] : memref<4xi32, #tpu.memory_space<smem>>
      %c0_i32_50 = arith.constant 0 : i32
      %c3_i32_51 = arith.constant 3 : i32
      %91 = arith.maxsi %c0_i32_50, %90 : i32
      %92 = arith.minsi %c3_i32_51, %91 : i32
      %c4_i32_52 = arith.constant 4 : i32
      %93 = arith.muli %88, %c4_i32_52 : i32
      %94 = arith.addi %93, %92 : i32
      %c0_i32_53 = arith.constant 0 : i32
      %c0_i32_54 = arith.constant 0 : i32
      %c0_i32_55 = arith.constant 0 : i32
      %95 = tpu.memref_slice %arg2[%94, %c0_i32_55] : memref<16x256xf32, #tpu.memory_space<any>> -> memref<1x256xf32, #tpu.memory_space<any>>
      %c0_i32_56 = arith.constant 0 : i32
      %c0_i32_57 = arith.constant 0 : i32
      %96 = tpu.memref_slice %arg5[%c0_i32_53, %c0_i32_56, %c0_i32_57] : memref<2x8x256xf32, #tpu.memory_space<vmem>> -> memref<1x1x256xf32, #tpu.memory_space<vmem>>
      %97 = tpu.memref_squeeze %96 : memref<1x1x256xf32, #tpu.memory_space<vmem>> -> memref<1x256xf32, #tpu.memory_space<vmem>>
      %98 = tpu.memref_slice %arg6[%c0_i32_54] : memref<2x!tpu.dma_semaphore, #tpu.memory_space<semaphore_mem>> -> memref<1x!tpu.dma_semaphore, #tpu.memory_space<semaphore_mem>>
      %99 = tpu.memref_squeeze %98 : memref<1x!tpu.dma_semaphore, #tpu.memory_space<semaphore_mem>> -> memref<!tpu.dma_semaphore, #tpu.memory_space<semaphore_mem>>
      tpu.enqueue_dma source(%95 : memref<1x256xf32, #tpu.memory_space<any>>) target(%97 : memref<1x256xf32, #tpu.memory_space<vmem>>) target_semaphore(%99 : memref<!tpu.dma_semaphore, #tpu.memory_space<semaphore_mem>>)
      %c1_i32_58 = arith.constant 1 : i32
      %c3_i32_59 = arith.constant 3 : i32
      %100 = arith.minsi %c1_i32_58, %c3_i32_59 : i32
      %101 = arith.index_cast %100 : i32 to index
      %102 = memref.load %arg1[%101] : memref<4xi32, #tpu.memory_space<smem>>
      %c0_i32_60 = arith.constant 0 : i32
      %c3_i32_61 = arith.constant 3 : i32
      %103 = arith.maxsi %c0_i32_60, %102 : i32
      %104 = arith.minsi %c3_i32_61, %103 : i32
      %c4_i32_62 = arith.constant 4 : i32
      %105 = arith.muli %100, %c4_i32_62 : i32
      %106 = arith.addi %105, %104 : i32
      %c0_i32_63 = arith.constant 0 : i32
      %c0_i32_64 = arith.constant 0 : i32
      %c0_i32_65 = arith.constant 0 : i32
      %107 = tpu.memref_slice %arg2[%106, %c0_i32_65] : memref<16x256xf32, #tpu.memory_space<any>> -> memref<1x256xf32, #tpu.memory_space<any>>
      %c1_i32_66 = arith.constant 1 : i32
      %c0_i32_67 = arith.constant 0 : i32
      %108 = tpu.memref_slice %arg5[%c0_i32_63, %c1_i32_66, %c0_i32_67] : memref<2x8x256xf32, #tpu.memory_space<vmem>> -> memref<1x1x256xf32, #tpu.memory_space<vmem>>
      %109 = tpu.memref_squeeze %108 : memref<1x1x256xf32, #tpu.memory_space<vmem>> -> memref<1x256xf32, #tpu.memory_space<vmem>>
      %110 = tpu.memref_slice %arg6[%c0_i32_64] : memref<2x!tpu.dma_semaphore, #tpu.memory_space<semaphore_mem>> -> memref<1x!tpu.dma_semaphore, #tpu.memory_space<semaphore_mem>>
      %111 = tpu.memref_squeeze %110 : memref<1x!tpu.dma_semaphore, #tpu.memory_space<semaphore_mem>> -> memref<!tpu.dma_semaphore, #tpu.memory_space<semaphore_mem>>
      tpu.enqueue_dma source(%107 : memref<1x256xf32, #tpu.memory_space<any>>) target(%109 : memref<1x256xf32, #tpu.memory_space<vmem>>) target_semaphore(%111 : memref<!tpu.dma_semaphore, #tpu.memory_space<semaphore_mem>>)
      %c2_i32_68 = arith.constant 2 : i32
      %c3_i32_69 = arith.constant 3 : i32
      %112 = arith.minsi %c2_i32_68, %c3_i32_69 : i32
      %113 = arith.index_cast %112 : i32 to index
      %114 = memref.load %arg1[%113] : memref<4xi32, #tpu.memory_space<smem>>
      %c0_i32_70 = arith.constant 0 : i32
      %c3_i32_71 = arith.constant 3 : i32
      %115 = arith.maxsi %c0_i32_70, %114 : i32
      %116 = arith.minsi %c3_i32_71, %115 : i32
      %c4_i32_72 = arith.constant 4 : i32
      %117 = arith.muli %112, %c4_i32_72 : i32
      %118 = arith.addi %117, %116 : i32
      %c0_i32_73 = arith.constant 0 : i32
      %c0_i32_74 = arith.constant 0 : i32
      %c0_i32_75 = arith.constant 0 : i32
      %119 = tpu.memref_slice %arg2[%118, %c0_i32_75] : memref<16x256xf32, #tpu.memory_space<any>> -> memref<1x256xf32, #tpu.memory_space<any>>
      %c2_i32_76 = arith.constant 2 : i32
      %c0_i32_77 = arith.constant 0 : i32
      %120 = tpu.memref_slice %arg5[%c0_i32_73, %c2_i32_76, %c0_i32_77] : memref<2x8x256xf32, #tpu.memory_space<vmem>> -> memref<1x1x256xf32, #tpu.memory_space<vmem>>
      %121 = tpu.memref_squeeze %120 : memref<1x1x256xf32, #tpu.memory_space<vmem>> -> memref<1x256xf32, #tpu.memory_space<vmem>>
      %122 = tpu.memref_slice %arg6[%c0_i32_74] : memref<2x!tpu.dma_semaphore, #tpu.memory_space<semaphore_mem>> -> memref<1x!tpu.dma_semaphore, #tpu.memory_space<semaphore_mem>>
      %123 = tpu.memref_squeeze %122 : memref<1x!tpu.dma_semaphore, #tpu.memory_space<semaphore_mem>> -> memref<!tpu.dma_semaphore, #tpu.memory_space<semaphore_mem>>
      tpu.enqueue_dma source(%119 : memref<1x256xf32, #tpu.memory_space<any>>) target(%121 : memref<1x256xf32, #tpu.memory_space<vmem>>) target_semaphore(%123 : memref<!tpu.dma_semaphore, #tpu.memory_space<semaphore_mem>>)
      %c3_i32_78 = arith.constant 3 : i32
      %c3_i32_79 = arith.constant 3 : i32
      %124 = arith.minsi %c3_i32_78, %c3_i32_79 : i32
      %125 = arith.index_cast %124 : i32 to index
      %126 = memref.load %arg1[%125] : memref<4xi32, #tpu.memory_space<smem>>
      %c0_i32_80 = arith.constant 0 : i32
      %c3_i32_81 = arith.constant 3 : i32
      %127 = arith.maxsi %c0_i32_80, %126 : i32
      %128 = arith.minsi %c3_i32_81, %127 : i32
      %c4_i32_82 = arith.constant 4 : i32
      %129 = arith.muli %124, %c4_i32_82 : i32
      %130 = arith.addi %129, %128 : i32
      %c0_i32_83 = arith.constant 0 : i32
      %c0_i32_84 = arith.constant 0 : i32
      %c0_i32_85 = arith.constant 0 : i32
      %131 = tpu.memref_slice %arg2[%130, %c0_i32_85] : memref<16x256xf32, #tpu.memory_space<any>> -> memref<1x256xf32, #tpu.memory_space<any>>
      %c3_i32_86 = arith.constant 3 : i32
      %c0_i32_87 = arith.constant 0 : i32
      %132 = tpu.memref_slice %arg5[%c0_i32_83, %c3_i32_86, %c0_i32_87] : memref<2x8x256xf32, #tpu.memory_space<vmem>> -> memref<1x1x256xf32, #tpu.memory_space<vmem>>
      %133 = tpu.memref_squeeze %132 : memref<1x1x256xf32, #tpu.memory_space<vmem>> -> memref<1x256xf32, #tpu.memory_space<vmem>>
      %134 = tpu.memref_slice %arg6[%c0_i32_84] : memref<2x!tpu.dma_semaphore, #tpu.memory_space<semaphore_mem>> -> memref<1x!tpu.dma_semaphore, #tpu.memory_space<semaphore_mem>>
      %135 = tpu.memref_squeeze %134 : memref<1x!tpu.dma_semaphore, #tpu.memory_space<semaphore_mem>> -> memref<!tpu.dma_semaphore, #tpu.memory_space<semaphore_mem>>
      tpu.enqueue_dma source(%131 : memref<1x256xf32, #tpu.memory_space<any>>) target(%133 : memref<1x256xf32, #tpu.memory_space<vmem>>) target_semaphore(%135 : memref<!tpu.dma_semaphore, #tpu.memory_space<semaphore_mem>>)
      %c4_i32_88 = arith.constant 4 : i32
      %c3_i32_89 = arith.constant 3 : i32
      %136 = arith.minsi %c4_i32_88, %c3_i32_89 : i32
      %137 = arith.index_cast %136 : i32 to index
      %138 = memref.load %arg1[%137] : memref<4xi32, #tpu.memory_space<smem>>
      %c0_i32_90 = arith.constant 0 : i32
      %c3_i32_91 = arith.constant 3 : i32
      %139 = arith.maxsi %c0_i32_90, %138 : i32
      %140 = arith.minsi %c3_i32_91, %139 : i32
      %c4_i32_92 = arith.constant 4 : i32
      %141 = arith.muli %136, %c4_i32_92 : i32
      %142 = arith.addi %141, %140 : i32
      %c0_i32_93 = arith.constant 0 : i32
      %c0_i32_94 = arith.constant 0 : i32
      %c0_i32_95 = arith.constant 0 : i32
      %143 = tpu.memref_slice %arg2[%142, %c0_i32_95] : memref<16x256xf32, #tpu.memory_space<any>> -> memref<1x256xf32, #tpu.memory_space<any>>
      %c4_i32_96 = arith.constant 4 : i32
      %c0_i32_97 = arith.constant 0 : i32
      %144 = tpu.memref_slice %arg5[%c0_i32_93, %c4_i32_96, %c0_i32_97] : memref<2x8x256xf32, #tpu.memory_space<vmem>> -> memref<1x1x256xf32, #tpu.memory_space<vmem>>
      %145 = tpu.memref_squeeze %144 : memref<1x1x256xf32, #tpu.memory_space<vmem>> -> memref<1x256xf32, #tpu.memory_space<vmem>>
      %146 = tpu.memref_slice %arg6[%c0_i32_94] : memref<2x!tpu.dma_semaphore, #tpu.memory_space<semaphore_mem>> -> memref<1x!tpu.dma_semaphore, #tpu.memory_space<semaphore_mem>>
      %147 = tpu.memref_squeeze %146 : memref<1x!tpu.dma_semaphore, #tpu.memory_space<semaphore_mem>> -> memref<!tpu.dma_semaphore, #tpu.memory_space<semaphore_mem>>
      tpu.enqueue_dma source(%143 : memref<1x256xf32, #tpu.memory_space<any>>) target(%145 : memref<1x256xf32, #tpu.memory_space<vmem>>) target_semaphore(%147 : memref<!tpu.dma_semaphore, #tpu.memory_space<semaphore_mem>>)
      %c5_i32 = arith.constant 5 : i32
      %c3_i32_98 = arith.constant 3 : i32
      %148 = arith.minsi %c5_i32, %c3_i32_98 : i32
      %149 = arith.index_cast %148 : i32 to index
      %150 = memref.load %arg1[%149] : memref<4xi32, #tpu.memory_space<smem>>
      %c0_i32_99 = arith.constant 0 : i32
      %c3_i32_100 = arith.constant 3 : i32
      %151 = arith.maxsi %c0_i32_99, %150 : i32
      %152 = arith.minsi %c3_i32_100, %151 : i32
      %c4_i32_101 = arith.constant 4 : i32
      %153 = arith.muli %148, %c4_i32_101 : i32
      %154 = arith.addi %153, %152 : i32
      %c0_i32_102 = arith.constant 0 : i32
      %c0_i32_103 = arith.constant 0 : i32
      %c0_i32_104 = arith.constant 0 : i32
      %155 = tpu.memref_slice %arg2[%154, %c0_i32_104] : memref<16x256xf32, #tpu.memory_space<any>> -> memref<1x256xf32, #tpu.memory_space<any>>
      %c5_i32_105 = arith.constant 5 : i32
      %c0_i32_106 = arith.constant 0 : i32
      %156 = tpu.memref_slice %arg5[%c0_i32_102, %c5_i32_105, %c0_i32_106] : memref<2x8x256xf32, #tpu.memory_space<vmem>> -> memref<1x1x256xf32, #tpu.memory_space<vmem>>
      %157 = tpu.memref_squeeze %156 : memref<1x1x256xf32, #tpu.memory_space<vmem>> -> memref<1x256xf32, #tpu.memory_space<vmem>>
      %158 = tpu.memref_slice %arg6[%c0_i32_103] : memref<2x!tpu.dma_semaphore, #tpu.memory_space<semaphore_mem>> -> memref<1x!tpu.dma_semaphore, #tpu.memory_space<semaphore_mem>>
      %159 = tpu.memref_squeeze %158 : memref<1x!tpu.dma_semaphore, #tpu.memory_space<semaphore_mem>> -> memref<!tpu.dma_semaphore, #tpu.memory_space<semaphore_mem>>
      tpu.enqueue_dma source(%155 : memref<1x256xf32, #tpu.memory_space<any>>) target(%157 : memref<1x256xf32, #tpu.memory_space<vmem>>) target_semaphore(%159 : memref<!tpu.dma_semaphore, #tpu.memory_space<semaphore_mem>>)
      %c6_i32 = arith.constant 6 : i32
      %c3_i32_107 = arith.constant 3 : i32
      %160 = arith.minsi %c6_i32, %c3_i32_107 : i32
      %161 = arith.index_cast %160 : i32 to index
      %162 = memref.load %arg1[%161] : memref<4xi32, #tpu.memory_space<smem>>
      %c0_i32_108 = arith.constant 0 : i32
      %c3_i32_109 = arith.constant 3 : i32
      %163 = arith.maxsi %c0_i32_108, %162 : i32
      %164 = arith.minsi %c3_i32_109, %163 : i32
      %c4_i32_110 = arith.constant 4 : i32
      %165 = arith.muli %160, %c4_i32_110 : i32
      %166 = arith.addi %165, %164 : i32
      %c0_i32_111 = arith.constant 0 : i32
      %c0_i32_112 = arith.constant 0 : i32
      %c0_i32_113 = arith.constant 0 : i32
      %167 = tpu.memref_slice %arg2[%166, %c0_i32_113] : memref<16x256xf32, #tpu.memory_space<any>> -> memref<1x256xf32, #tpu.memory_space<any>>
      %c6_i32_114 = arith.constant 6 : i32
      %c0_i32_115 = arith.constant 0 : i32
      %168 = tpu.memref_slice %arg5[%c0_i32_111, %c6_i32_114, %c0_i32_115] : memref<2x8x256xf32, #tpu.memory_space<vmem>> -> memref<1x1x256xf32, #tpu.memory_space<vmem>>
      %169 = tpu.memref_squeeze %168 : memref<1x1x256xf32, #tpu.memory_space<vmem>> -> memref<1x256xf32, #tpu.memory_space<vmem>>
      %170 = tpu.memref_slice %arg6[%c0_i32_112] : memref<2x!tpu.dma_semaphore, #tpu.memory_space<semaphore_mem>> -> memref<1x!tpu.dma_semaphore, #tpu.memory_space<semaphore_mem>>
      %171 = tpu.memref_squeeze %170 : memref<1x!tpu.dma_semaphore, #tpu.memory_space<semaphore_mem>> -> memref<!tpu.dma_semaphore, #tpu.memory_space<semaphore_mem>>
      tpu.enqueue_dma source(%167 : memref<1x256xf32, #tpu.memory_space<any>>) target(%169 : memref<1x256xf32, #tpu.memory_space<vmem>>) target_semaphore(%171 : memref<!tpu.dma_semaphore, #tpu.memory_space<semaphore_mem>>)
      %c7_i32 = arith.constant 7 : i32
      %c3_i32_116 = arith.constant 3 : i32
      %172 = arith.minsi %c7_i32, %c3_i32_116 : i32
      %173 = arith.index_cast %172 : i32 to index
      %174 = memref.load %arg1[%173] : memref<4xi32, #tpu.memory_space<smem>>
      %c0_i32_117 = arith.constant 0 : i32
      %c3_i32_118 = arith.constant 3 : i32
      %175 = arith.maxsi %c0_i32_117, %174 : i32
      %176 = arith.minsi %c3_i32_118, %175 : i32
      %c4_i32_119 = arith.constant 4 : i32
      %177 = arith.muli %172, %c4_i32_119 : i32
      %178 = arith.addi %177, %176 : i32
      %c0_i32_120 = arith.constant 0 : i32
      %c0_i32_121 = arith.constant 0 : i32
      %c0_i32_122 = arith.constant 0 : i32
      %179 = tpu.memref_slice %arg2[%178, %c0_i32_122] : memref<16x256xf32, #tpu.memory_space<any>> -> memref<1x256xf32, #tpu.memory_space<any>>
      %c7_i32_123 = arith.constant 7 : i32
      %c0_i32_124 = arith.constant 0 : i32
      %180 = tpu.memref_slice %arg5[%c0_i32_120, %c7_i32_123, %c0_i32_124] : memref<2x8x256xf32, #tpu.memory_space<vmem>> -> memref<1x1x256xf32, #tpu.memory_space<vmem>>
      %181 = tpu.memref_squeeze %180 : memref<1x1x256xf32, #tpu.memory_space<vmem>> -> memref<1x256xf32, #tpu.memory_space<vmem>>
      %182 = tpu.memref_slice %arg6[%c0_i32_121] : memref<2x!tpu.dma_semaphore, #tpu.memory_space<semaphore_mem>> -> memref<1x!tpu.dma_semaphore, #tpu.memory_space<semaphore_mem>>
      %183 = tpu.memref_squeeze %182 : memref<1x!tpu.dma_semaphore, #tpu.memory_space<semaphore_mem>> -> memref<!tpu.dma_semaphore, #tpu.memory_space<semaphore_mem>>
      tpu.enqueue_dma source(%179 : memref<1x256xf32, #tpu.memory_space<any>>) target(%181 : memref<1x256xf32, #tpu.memory_space<vmem>>) target_semaphore(%183 : memref<!tpu.dma_semaphore, #tpu.memory_space<semaphore_mem>>)
    } else {
    }
    %c1_i32_5 = arith.constant 1 : i32
    %13 = arith.addi %arg0, %c1_i32_5 : i32
    %c1_i32_6 = arith.constant 1 : i32
    %14 = arith.cmpi slt, %13, %c1_i32_6 : i32
    %15 = arith.extui %14 : i1 to i32
    %c0_i32_7 = arith.constant 0 : i32
    %16 = arith.cmpi ne, %15, %c0_i32_7 : i32
    scf.if %16 {
      %c1_i32_42 = arith.constant 1 : i32
      %84 = arith.addi %arg0, %c1_i32_42 : i32
      %c1_i32_43 = arith.constant 1 : i32
      %85 = arith.subi %c1_i32_43, %9 : i32
      %c8_i32_44 = arith.constant 8 : i32
      %86 = arith.muli %84, %c8_i32_44 : i32
      %c0_i32_45 = arith.constant 0 : i32
      %87 = arith.addi %86, %c0_i32_45 : i32
      %c3_i32 = arith.constant 3 : i32
      %88 = arith.minsi %87, %c3_i32 : i32
      %89 = arith.index_cast %88 : i32 to index
      %90 = memref.load %arg1[%89] : memref<4xi32, #tpu.memory_space<smem>>
      %c0_i32_46 = arith.constant 0 : i32
      %c3_i32_47 = arith.constant 3 : i32
      %91 = arith.maxsi %c0_i32_46, %90 : i32
      %92 = arith.minsi %c3_i32_47, %91 : i32
      %c4_i32_48 = arith.constant 4 : i32
      %93 = arith.muli %88, %c4_i32_48 : i32
      %94 = arith.addi %93, %92 : i32
      %c0_i32_49 = arith.constant 0 : i32
      %95 = tpu.memref_slice %arg2[%94, %c0_i32_49] : memref<16x256xf32, #tpu.memory_space<any>> -> memref<1x256xf32, #tpu.memory_space<any>>
      %c0_i32_50 = arith.constant 0 : i32
      %c0_i32_51 = arith.constant 0 : i32
      %96 = tpu.memref_slice %arg5[%85, %c0_i32_50, %c0_i32_51] : memref<2x8x256xf32, #tpu.memory_space<vmem>> -> memref<1x1x256xf32, #tpu.memory_space<vmem>>
      %97 = tpu.memref_squeeze %96 : memref<1x1x256xf32, #tpu.memory_space<vmem>> -> memref<1x256xf32, #tpu.memory_space<vmem>>
      %98 = tpu.memref_slice %arg6[%85] : memref<2x!tpu.dma_semaphore, #tpu.memory_space<semaphore_mem>> -> memref<1x!tpu.dma_semaphore, #tpu.memory_space<semaphore_mem>>
      %99 = tpu.memref_squeeze %98 : memref<1x!tpu.dma_semaphore, #tpu.memory_space<semaphore_mem>> -> memref<!tpu.dma_semaphore, #tpu.memory_space<semaphore_mem>>
      tpu.enqueue_dma source(%95 : memref<1x256xf32, #tpu.memory_space<any>>) target(%97 : memref<1x256xf32, #tpu.memory_space<vmem>>) target_semaphore(%99 : memref<!tpu.dma_semaphore, #tpu.memory_space<semaphore_mem>>)
      %c1_i32_52 = arith.constant 1 : i32
      %100 = arith.addi %86, %c1_i32_52 : i32
      %c3_i32_53 = arith.constant 3 : i32
      %101 = arith.minsi %100, %c3_i32_53 : i32
      %102 = arith.index_cast %101 : i32 to index
      %103 = memref.load %arg1[%102] : memref<4xi32, #tpu.memory_space<smem>>
      %c0_i32_54 = arith.constant 0 : i32
      %c3_i32_55 = arith.constant 3 : i32
      %104 = arith.maxsi %c0_i32_54, %103 : i32
      %105 = arith.minsi %c3_i32_55, %104 : i32
      %c4_i32_56 = arith.constant 4 : i32
      %106 = arith.muli %101, %c4_i32_56 : i32
      %107 = arith.addi %106, %105 : i32
      %c0_i32_57 = arith.constant 0 : i32
      %108 = tpu.memref_slice %arg2[%107, %c0_i32_57] : memref<16x256xf32, #tpu.memory_space<any>> -> memref<1x256xf32, #tpu.memory_space<any>>
      %c1_i32_58 = arith.constant 1 : i32
      %c0_i32_59 = arith.constant 0 : i32
      %109 = tpu.memref_slice %arg5[%85, %c1_i32_58, %c0_i32_59] : memref<2x8x256xf32, #tpu.memory_space<vmem>> -> memref<1x1x256xf32, #tpu.memory_space<vmem>>
      %110 = tpu.memref_squeeze %109 : memref<1x1x256xf32, #tpu.memory_space<vmem>> -> memref<1x256xf32, #tpu.memory_space<vmem>>
      %111 = tpu.memref_slice %arg6[%85] : memref<2x!tpu.dma_semaphore, #tpu.memory_space<semaphore_mem>> -> memref<1x!tpu.dma_semaphore, #tpu.memory_space<semaphore_mem>>
      %112 = tpu.memref_squeeze %111 : memref<1x!tpu.dma_semaphore, #tpu.memory_space<semaphore_mem>> -> memref<!tpu.dma_semaphore, #tpu.memory_space<semaphore_mem>>
      tpu.enqueue_dma source(%108 : memref<1x256xf32, #tpu.memory_space<any>>) target(%110 : memref<1x256xf32, #tpu.memory_space<vmem>>) target_semaphore(%112 : memref<!tpu.dma_semaphore, #tpu.memory_space<semaphore_mem>>)
      %c2_i32_60 = arith.constant 2 : i32
      %113 = arith.addi %86, %c2_i32_60 : i32
      %c3_i32_61 = arith.constant 3 : i32
      %114 = arith.minsi %113, %c3_i32_61 : i32
      %115 = arith.index_cast %114 : i32 to index
      %116 = memref.load %arg1[%115] : memref<4xi32, #tpu.memory_space<smem>>
      %c0_i32_62 = arith.constant 0 : i32
      %c3_i32_63 = arith.constant 3 : i32
      %117 = arith.maxsi %c0_i32_62, %116 : i32
      %118 = arith.minsi %c3_i32_63, %117 : i32
      %c4_i32_64 = arith.constant 4 : i32
      %119 = arith.muli %114, %c4_i32_64 : i32
      %120 = arith.addi %119, %118 : i32
      %c0_i32_65 = arith.constant 0 : i32
      %121 = tpu.memref_slice %arg2[%120, %c0_i32_65] : memref<16x256xf32, #tpu.memory_space<any>> -> memref<1x256xf32, #tpu.memory_space<any>>
      %c2_i32_66 = arith.constant 2 : i32
      %c0_i32_67 = arith.constant 0 : i32
      %122 = tpu.memref_slice %arg5[%85, %c2_i32_66, %c0_i32_67] : memref<2x8x256xf32, #tpu.memory_space<vmem>> -> memref<1x1x256xf32, #tpu.memory_space<vmem>>
      %123 = tpu.memref_squeeze %122 : memref<1x1x256xf32, #tpu.memory_space<vmem>> -> memref<1x256xf32, #tpu.memory_space<vmem>>
      %124 = tpu.memref_slice %arg6[%85] : memref<2x!tpu.dma_semaphore, #tpu.memory_space<semaphore_mem>> -> memref<1x!tpu.dma_semaphore, #tpu.memory_space<semaphore_mem>>
      %125 = tpu.memref_squeeze %124 : memref<1x!tpu.dma_semaphore, #tpu.memory_space<semaphore_mem>> -> memref<!tpu.dma_semaphore, #tpu.memory_space<semaphore_mem>>
      tpu.enqueue_dma source(%121 : memref<1x256xf32, #tpu.memory_space<any>>) target(%123 : memref<1x256xf32, #tpu.memory_space<vmem>>) target_semaphore(%125 : memref<!tpu.dma_semaphore, #tpu.memory_space<semaphore_mem>>)
      %c3_i32_68 = arith.constant 3 : i32
      %126 = arith.addi %86, %c3_i32_68 : i32
      %c3_i32_69 = arith.constant 3 : i32
      %127 = arith.minsi %126, %c3_i32_69 : i32
      %128 = arith.index_cast %127 : i32 to index
      %129 = memref.load %arg1[%128] : memref<4xi32, #tpu.memory_space<smem>>
      %c0_i32_70 = arith.constant 0 : i32
      %c3_i32_71 = arith.constant 3 : i32
      %130 = arith.maxsi %c0_i32_70, %129 : i32
      %131 = arith.minsi %c3_i32_71, %130 : i32
      %c4_i32_72 = arith.constant 4 : i32
      %132 = arith.muli %127, %c4_i32_72 : i32
      %133 = arith.addi %132, %131 : i32
      %c0_i32_73 = arith.constant 0 : i32
      %134 = tpu.memref_slice %arg2[%133, %c0_i32_73] : memref<16x256xf32, #tpu.memory_space<any>> -> memref<1x256xf32, #tpu.memory_space<any>>
      %c3_i32_74 = arith.constant 3 : i32
      %c0_i32_75 = arith.constant 0 : i32
      %135 = tpu.memref_slice %arg5[%85, %c3_i32_74, %c0_i32_75] : memref<2x8x256xf32, #tpu.memory_space<vmem>> -> memref<1x1x256xf32, #tpu.memory_space<vmem>>
      %136 = tpu.memref_squeeze %135 : memref<1x1x256xf32, #tpu.memory_space<vmem>> -> memref<1x256xf32, #tpu.memory_space<vmem>>
      %137 = tpu.memref_slice %arg6[%85] : memref<2x!tpu.dma_semaphore, #tpu.memory_space<semaphore_mem>> -> memref<1x!tpu.dma_semaphore, #tpu.memory_space<semaphore_mem>>
      %138 = tpu.memref_squeeze %137 : memref<1x!tpu.dma_semaphore, #tpu.memory_space<semaphore_mem>> -> memref<!tpu.dma_semaphore, #tpu.memory_space<semaphore_mem>>
      tpu.enqueue_dma source(%134 : memref<1x256xf32, #tpu.memory_space<any>>) target(%136 : memref<1x256xf32, #tpu.memory_space<vmem>>) target_semaphore(%138 : memref<!tpu.dma_semaphore, #tpu.memory_space<semaphore_mem>>)
      %c4_i32_76 = arith.constant 4 : i32
      %139 = arith.addi %86, %c4_i32_76 : i32
      %c3_i32_77 = arith.constant 3 : i32
      %140 = arith.minsi %139, %c3_i32_77 : i32
      %141 = arith.index_cast %140 : i32 to index
      %142 = memref.load %arg1[%141] : memref<4xi32, #tpu.memory_space<smem>>
      %c0_i32_78 = arith.constant 0 : i32
      %c3_i32_79 = arith.constant 3 : i32
      %143 = arith.maxsi %c0_i32_78, %142 : i32
      %144 = arith.minsi %c3_i32_79, %143 : i32
      %c4_i32_80 = arith.constant 4 : i32
      %145 = arith.muli %140, %c4_i32_80 : i32
      %146 = arith.addi %145, %144 : i32
      %c0_i32_81 = arith.constant 0 : i32
      %147 = tpu.memref_slice %arg2[%146, %c0_i32_81] : memref<16x256xf32, #tpu.memory_space<any>> -> memref<1x256xf32, #tpu.memory_space<any>>
      %c4_i32_82 = arith.constant 4 : i32
      %c0_i32_83 = arith.constant 0 : i32
      %148 = tpu.memref_slice %arg5[%85, %c4_i32_82, %c0_i32_83] : memref<2x8x256xf32, #tpu.memory_space<vmem>> -> memref<1x1x256xf32, #tpu.memory_space<vmem>>
      %149 = tpu.memref_squeeze %148 : memref<1x1x256xf32, #tpu.memory_space<vmem>> -> memref<1x256xf32, #tpu.memory_space<vmem>>
      %150 = tpu.memref_slice %arg6[%85] : memref<2x!tpu.dma_semaphore, #tpu.memory_space<semaphore_mem>> -> memref<1x!tpu.dma_semaphore, #tpu.memory_space<semaphore_mem>>
      %151 = tpu.memref_squeeze %150 : memref<1x!tpu.dma_semaphore, #tpu.memory_space<semaphore_mem>> -> memref<!tpu.dma_semaphore, #tpu.memory_space<semaphore_mem>>
      tpu.enqueue_dma source(%147 : memref<1x256xf32, #tpu.memory_space<any>>) target(%149 : memref<1x256xf32, #tpu.memory_space<vmem>>) target_semaphore(%151 : memref<!tpu.dma_semaphore, #tpu.memory_space<semaphore_mem>>)
      %c5_i32 = arith.constant 5 : i32
      %152 = arith.addi %86, %c5_i32 : i32
      %c3_i32_84 = arith.constant 3 : i32
      %153 = arith.minsi %152, %c3_i32_84 : i32
      %154 = arith.index_cast %153 : i32 to index
      %155 = memref.load %arg1[%154] : memref<4xi32, #tpu.memory_space<smem>>
      %c0_i32_85 = arith.constant 0 : i32
      %c3_i32_86 = arith.constant 3 : i32
      %156 = arith.maxsi %c0_i32_85, %155 : i32
      %157 = arith.minsi %c3_i32_86, %156 : i32
      %c4_i32_87 = arith.constant 4 : i32
      %158 = arith.muli %153, %c4_i32_87 : i32
      %159 = arith.addi %158, %157 : i32
      %c0_i32_88 = arith.constant 0 : i32
      %160 = tpu.memref_slice %arg2[%159, %c0_i32_88] : memref<16x256xf32, #tpu.memory_space<any>> -> memref<1x256xf32, #tpu.memory_space<any>>
      %c5_i32_89 = arith.constant 5 : i32
      %c0_i32_90 = arith.constant 0 : i32
      %161 = tpu.memref_slice %arg5[%85, %c5_i32_89, %c0_i32_90] : memref<2x8x256xf32, #tpu.memory_space<vmem>> -> memref<1x1x256xf32, #tpu.memory_space<vmem>>
      %162 = tpu.memref_squeeze %161 : memref<1x1x256xf32, #tpu.memory_space<vmem>> -> memref<1x256xf32, #tpu.memory_space<vmem>>
      %163 = tpu.memref_slice %arg6[%85] : memref<2x!tpu.dma_semaphore, #tpu.memory_space<semaphore_mem>> -> memref<1x!tpu.dma_semaphore, #tpu.memory_space<semaphore_mem>>
      %164 = tpu.memref_squeeze %163 : memref<1x!tpu.dma_semaphore, #tpu.memory_space<semaphore_mem>> -> memref<!tpu.dma_semaphore, #tpu.memory_space<semaphore_mem>>
      tpu.enqueue_dma source(%160 : memref<1x256xf32, #tpu.memory_space<any>>) target(%162 : memref<1x256xf32, #tpu.memory_space<vmem>>) target_semaphore(%164 : memref<!tpu.dma_semaphore, #tpu.memory_space<semaphore_mem>>)
      %c6_i32 = arith.constant 6 : i32
      %165 = arith.addi %86, %c6_i32 : i32
      %c3_i32_91 = arith.constant 3 : i32
      %166 = arith.minsi %165, %c3_i32_91 : i32
      %167 = arith.index_cast %166 : i32 to index
      %168 = memref.load %arg1[%167] : memref<4xi32, #tpu.memory_space<smem>>
      %c0_i32_92 = arith.constant 0 : i32
      %c3_i32_93 = arith.constant 3 : i32
      %169 = arith.maxsi %c0_i32_92, %168 : i32
      %170 = arith.minsi %c3_i32_93, %169 : i32
      %c4_i32_94 = arith.constant 4 : i32
      %171 = arith.muli %166, %c4_i32_94 : i32
      %172 = arith.addi %171, %170 : i32
      %c0_i32_95 = arith.constant 0 : i32
      %173 = tpu.memref_slice %arg2[%172, %c0_i32_95] : memref<16x256xf32, #tpu.memory_space<any>> -> memref<1x256xf32, #tpu.memory_space<any>>
      %c6_i32_96 = arith.constant 6 : i32
      %c0_i32_97 = arith.constant 0 : i32
      %174 = tpu.memref_slice %arg5[%85, %c6_i32_96, %c0_i32_97] : memref<2x8x256xf32, #tpu.memory_space<vmem>> -> memref<1x1x256xf32, #tpu.memory_space<vmem>>
      %175 = tpu.memref_squeeze %174 : memref<1x1x256xf32, #tpu.memory_space<vmem>> -> memref<1x256xf32, #tpu.memory_space<vmem>>
      %176 = tpu.memref_slice %arg6[%85] : memref<2x!tpu.dma_semaphore, #tpu.memory_space<semaphore_mem>> -> memref<1x!tpu.dma_semaphore, #tpu.memory_space<semaphore_mem>>
      %177 = tpu.memref_squeeze %176 : memref<1x!tpu.dma_semaphore, #tpu.memory_space<semaphore_mem>> -> memref<!tpu.dma_semaphore, #tpu.memory_space<semaphore_mem>>
      tpu.enqueue_dma source(%173 : memref<1x256xf32, #tpu.memory_space<any>>) target(%175 : memref<1x256xf32, #tpu.memory_space<vmem>>) target_semaphore(%177 : memref<!tpu.dma_semaphore, #tpu.memory_space<semaphore_mem>>)
      %c7_i32 = arith.constant 7 : i32
      %178 = arith.addi %86, %c7_i32 : i32
      %c3_i32_98 = arith.constant 3 : i32
      %179 = arith.minsi %178, %c3_i32_98 : i32
      %180 = arith.index_cast %179 : i32 to index
      %181 = memref.load %arg1[%180] : memref<4xi32, #tpu.memory_space<smem>>
      %c0_i32_99 = arith.constant 0 : i32
      %c3_i32_100 = arith.constant 3 : i32
      %182 = arith.maxsi %c0_i32_99, %181 : i32
      %183 = arith.minsi %c3_i32_100, %182 : i32
      %c4_i32_101 = arith.constant 4 : i32
      %184 = arith.muli %179, %c4_i32_101 : i32
      %185 = arith.addi %184, %183 : i32
      %c0_i32_102 = arith.constant 0 : i32
      %186 = tpu.memref_slice %arg2[%185, %c0_i32_102] : memref<16x256xf32, #tpu.memory_space<any>> -> memref<1x256xf32, #tpu.memory_space<any>>
      %c7_i32_103 = arith.constant 7 : i32
      %c0_i32_104 = arith.constant 0 : i32
      %187 = tpu.memref_slice %arg5[%85, %c7_i32_103, %c0_i32_104] : memref<2x8x256xf32, #tpu.memory_space<vmem>> -> memref<1x1x256xf32, #tpu.memory_space<vmem>>
      %188 = tpu.memref_squeeze %187 : memref<1x1x256xf32, #tpu.memory_space<vmem>> -> memref<1x256xf32, #tpu.memory_space<vmem>>
      %189 = tpu.memref_slice %arg6[%85] : memref<2x!tpu.dma_semaphore, #tpu.memory_space<semaphore_mem>> -> memref<1x!tpu.dma_semaphore, #tpu.memory_space<semaphore_mem>>
      %190 = tpu.memref_squeeze %189 : memref<1x!tpu.dma_semaphore, #tpu.memory_space<semaphore_mem>> -> memref<!tpu.dma_semaphore, #tpu.memory_space<semaphore_mem>>
      tpu.enqueue_dma source(%186 : memref<1x256xf32, #tpu.memory_space<any>>) target(%188 : memref<1x256xf32, #tpu.memory_space<vmem>>) target_semaphore(%190 : memref<!tpu.dma_semaphore, #tpu.memory_space<semaphore_mem>>)
    } else {
    }
    %c0_i32_8 = arith.constant 0 : i32
    %c0_i32_9 = arith.constant 0 : i32
    %17 = tpu.memref_slice %arg5[%9, %c0_i32_8, %c0_i32_9] : memref<2x8x256xf32, #tpu.memory_space<vmem>> -> memref<1x8x256xf32, #tpu.memory_space<vmem>>
    %18 = tpu.memref_squeeze %17 : memref<1x8x256xf32, #tpu.memory_space<vmem>> -> memref<8x256xf32, #tpu.memory_space<vmem>>
    %c0_i32_10 = arith.constant 0 : i32
    %c0_i32_11 = arith.constant 0 : i32
    %19 = tpu.memref_slice %arg5[%9, %c0_i32_10, %c0_i32_11] : memref<2x8x256xf32, #tpu.memory_space<vmem>> -> memref<1x8x256xf32, #tpu.memory_space<vmem>>
    %20 = tpu.memref_squeeze %19 : memref<1x8x256xf32, #tpu.memory_space<vmem>> -> memref<8x256xf32, #tpu.memory_space<vmem>>
    %21 = tpu.memref_slice %arg6[%9] : memref<2x!tpu.dma_semaphore, #tpu.memory_space<semaphore_mem>> -> memref<1x!tpu.dma_semaphore, #tpu.memory_space<semaphore_mem>>
    %22 = tpu.memref_squeeze %21 : memref<1x!tpu.dma_semaphore, #tpu.memory_space<semaphore_mem>> -> memref<!tpu.dma_semaphore, #tpu.memory_space<semaphore_mem>>
    tpu.wait_dma2 semaphore(%22 : memref<!tpu.dma_semaphore, #tpu.memory_space<semaphore_mem>>) src(%18 : memref<8x256xf32, #tpu.memory_space<vmem>>) dst(%20 : memref<8x256xf32, #tpu.memory_space<vmem>>)
    %23 = arith.index_cast %9 : i32 to index
    %c0 = arith.constant 0 : index
    %c0_12 = arith.constant 0 : index
    %24 = vector.load %arg5[%23, %c0, %c0_12] : memref<2x8x256xf32, #tpu.memory_space<vmem>>, vector<1x8x256xf32>
    %25 = vector.shape_cast %24 : vector<1x8x256xf32> to vector<8x256xf32>
    %c0_13 = arith.constant 0 : index
    %c0_14 = arith.constant 0 : index
    %26 = vector.load %arg3[%c0_13, %c0_14] : memref<8x256xf32, #tpu.memory_space<vmem>>, vector<8x256xf32>
    %27 = tpu.iota {dimensions = array<i32: 0>} : vector<8x256xi32>
    %c8_i32 = arith.constant 8 : i32
    %28 = arith.muli %arg0, %c8_i32 : i32
    %29 = vector.broadcast %28 : i32 to vector<8x256xi32>
    %30 = arith.addi %27, %29 : vector<8x256xi32>
    %31 = tpu.iota {dimensions = array<i32: 1>} : vector<8x256xi32>
    %c4_i32 = arith.constant 4 : i32
    %32 = vector.broadcast %c4_i32 : i32 to vector<8x256xi32>
    %33 = arith.cmpi slt, %30, %32 : vector<8x256xi32>
    %c256_i32 = arith.constant 256 : i32
    %34 = vector.broadcast %c256_i32 : i32 to vector<8x256xi32>
    %35 = arith.cmpi slt, %31, %34 : vector<8x256xi32>
    %36 = arith.andi %33, %35 : vector<8x256xi1>
    %cst = arith.constant 0.000000e+00 : f32
    %37 = vector.broadcast %cst : f32 to vector<8x256xf32>
    %38 = arith.maximumf %25, %37 : vector<8x256xf32>
    %39 = arith.mulf %25, %26 : vector<8x256xf32>
    %40 = arith.subf %38, %39 : vector<8x256xf32>
    %41 = math.absf %25 : vector<8x256xf32>
    %cst_15 = arith.constant 0.000000e+00 : f32
    %42 = vector.broadcast %cst_15 : f32 to vector<8x256xf32>
    %43 = arith.subf %42, %41 : vector<8x256xf32>
    %44 = math.exp %43 : vector<8x256xf32>
    %45 = math.log1p %44 : vector<8x256xf32>
    %46 = arith.addf %40, %45 : vector<8x256xf32>
    %cst_16 = arith.constant 5.000000e-01 : f32
    %47 = vector.broadcast %cst_16 : f32 to vector<8x256xf32>
    %48 = arith.cmpf ogt, %26, %47 : vector<8x256xf32>
    %cst_17 = arith.constant 0.000000e+00 : f32
    %49 = vector.broadcast %cst_17 : f32 to vector<8x256xf32>
    %50 = arith.cmpf ogt, %25, %49 : vector<8x256xf32>
    %51 = arith.xori %50, %48 : vector<8x256xi1>
    %52 = arith.andi %51, %36 : vector<8x256xi1>
    %53 = arith.andi %52, %48 : vector<8x256xi1>
    %c0_18 = arith.constant 0 : index
    %c0_19 = arith.constant 0 : index
    %54 = vector.load %arg7[%c0_18, %c0_19] : memref<8x256xf32, #tpu.memory_space<vmem>>, vector<8x256xf32>
    %cst_20 = arith.constant 0.000000e+00 : f32
    %55 = vector.broadcast %cst_20 : f32 to vector<8x256xf32>
    %56 = arith.select %36, %46, %55 : vector<8x256xi1>, vector<8x256xf32>
    %57 = arith.addf %54, %56 : vector<8x256xf32>
    %c0_21 = arith.constant 0 : index
    %c0_22 = arith.constant 0 : index
    %58 = vector.load %arg7[%c0_21, %c0_22] : memref<8x256xf32, #tpu.memory_space<vmem>>, vector<8x256xf32>
    tpu.vector_store %arg7[%c0_21, %c0_22], %57 {strides = array<i32>} : memref<8x256xf32, #tpu.memory_space<vmem>>, vector<8x256xf32>,
    %c0_23 = arith.constant 0 : index
    %c0_24 = arith.constant 0 : index
    %c0_25 = arith.constant 0 : index
    %59 = vector.load %arg8[%c0_23, %c0_24, %c0_25] : memref<2x8x1xf32, #tpu.memory_space<vmem>>, vector<1x8x1xf32>
    %60 = vector.shape_cast %59 : vector<1x8x1xf32> to vector<8x1xf32>
    %cst_26 = arith.constant 1.000000e+00 : f32
    %cst_27 = arith.constant 0.000000e+00 : f32
    %61 = vector.broadcast %cst_26 : f32 to vector<8x256xf32>
    %62 = vector.broadcast %cst_27 : f32 to vector<8x256xf32>
    %63 = arith.select %52, %61, %62 : vector<8x256xi1>, vector<8x256xf32>
    %cst_28 = arith.constant dense<0.000000e+00> : vector<8xf32>
    %64 = vector.multi_reduction <add>, %63, %cst_28 [1] : vector<8x256xf32> to vector<8xf32>
    %65 = vector.shape_cast %64 : vector<8xf32> to vector<8x1xf32>
    %66 = arith.addf %60, %65 : vector<8x1xf32>
    %c0_29 = arith.constant 0 : index
    %c0_30 = arith.constant 0 : index
    %c0_31 = arith.constant 0 : index
    %67 = vector.load %arg8[%c0_29, %c0_30, %c0_31] : memref<2x8x1xf32, #tpu.memory_space<vmem>>, vector<1x8x1xf32>
    %68 = vector.shape_cast %67 : vector<1x8x1xf32> to vector<8x1xf32>
    %69 = vector.shape_cast %66 : vector<8x1xf32> to vector<1x8x1xf32>
    tpu.vector_store %arg8[%c0_29, %c0_30, %c0_31], %69 {strides = array<i32>} : memref<2x8x1xf32, #tpu.memory_space<vmem>>, vector<1x8x1xf32>,
    %c1 = arith.constant 1 : index
    %c0_32 = arith.constant 0 : index
    %c0_33 = arith.constant 0 : index
    %70 = vector.load %arg8[%c1, %c0_32, %c0_33] : memref<2x8x1xf32, #tpu.memory_space<vmem>>, vector<1x8x1xf32>
    %71 = vector.shape_cast %70 : vector<1x8x1xf32> to vector<8x1xf32>
    %cst_34 = arith.constant 1.000000e+00 : f32
    %cst_35 = arith.constant 0.000000e+00 : f32
    %72 = vector.broadcast %cst_34 : f32 to vector<8x256xf32>
    %73 = vector.broadcast %cst_35 : f32 to vector<8x256xf32>
    %74 = arith.select %53, %72, %73 : vector<8x256xi1>, vector<8x256xf32>
    %cst_36 = arith.constant dense<0.000000e+00> : vector<8xf32>
    %75 = vector.multi_reduction <add>, %74, %cst_36 [1] : vector<8x256xf32> to vector<8xf32>
    %76 = vector.shape_cast %75 : vector<8xf32> to vector<8x1xf32>
    %77 = arith.addf %71, %76 : vector<8x1xf32>
    %c1_37 = arith.constant 1 : index
    %c0_38 = arith.constant 0 : index
    %c0_39 = arith.constant 0 : index
    %78 = vector.load %arg8[%c1_37, %c0_38, %c0_39] : memref<2x8x1xf32, #tpu.memory_space<vmem>>, vector<1x8x1xf32>
    %79 = vector.shape_cast %78 : vector<1x8x1xf32> to vector<8x1xf32>
    %80 = vector.shape_cast %77 : vector<8x1xf32> to vector<1x8x1xf32>
    tpu.vector_store %arg8[%c1_37, %c0_38, %c0_39], %80 {strides = array<i32>} : memref<2x8x1xf32, #tpu.memory_space<vmem>>, vector<1x8x1xf32>,
    %c0_i32_40 = arith.constant 0 : i32
    %81 = arith.cmpi eq, %arg0, %c0_i32_40 : i32
    %82 = arith.extui %81 : i1 to i32
    %c0_i32_41 = arith.constant 0 : i32
    %83 = arith.cmpi ne, %82, %c0_i32_41 : i32
    scf.if %83 {
      %c0_42 = arith.constant 0 : index
      %c0_43 = arith.constant 0 : index
      %84 = vector.load %arg7[%c0_42, %c0_43] : memref<8x256xf32, #tpu.memory_space<vmem>>, vector<8x256xf32>
      %85 = vector.shape_cast %84 : vector<8x256xf32> to vector<1x8x256xf32>
      %cst_44 = arith.constant dense<0.000000e+00> : vector<1xf32>
      %86 = vector.multi_reduction <add>, %85, %cst_44 [1, 2] : vector<1x8x256xf32> to vector<1xf32>
      %87 = vector.shape_cast %86 : vector<1xf32> to vector<1x1x1xf32>
      %88 = vector.extract %87[0, 0, 0] : f32 from vector<1x1x1xf32>
      %c0_45 = arith.constant 0 : index
      %89 = memref.load %arg4[%c0_45] : memref<8xf32, #tpu.memory_space<smem>>
      memref.store %88, %arg4[%c0_45] : memref<8xf32, #tpu.memory_space<smem>>
      %c0_46 = arith.constant 0 : index
      %c0_47 = arith.constant 0 : index
      %c0_48 = arith.constant 0 : index
      %90 = vector.load %arg8[%c0_46, %c0_47, %c0_48] : memref<2x8x1xf32, #tpu.memory_space<vmem>>, vector<1x8x1xf32>
      %91 = vector.shape_cast %90 : vector<1x8x1xf32> to vector<8x1xf32>
      %92 = vector.shape_cast %91 : vector<8x1xf32> to vector<1x8x1xf32>
      %cst_49 = arith.constant dense<0.000000e+00> : vector<1xf32>
      %93 = vector.multi_reduction <add>, %92, %cst_49 [1, 2] : vector<1x8x1xf32> to vector<1xf32>
      %94 = vector.shape_cast %93 : vector<1xf32> to vector<1x1x1xf32>
      %95 = vector.extract %94[0, 0, 0] : f32 from vector<1x1x1xf32>
      %c1_50 = arith.constant 1 : index
      %96 = memref.load %arg4[%c1_50] : memref<8xf32, #tpu.memory_space<smem>>
      memref.store %95, %arg4[%c1_50] : memref<8xf32, #tpu.memory_space<smem>>
      %c1_51 = arith.constant 1 : index
      %c0_52 = arith.constant 0 : index
      %c0_53 = arith.constant 0 : index
      %97 = vector.load %arg8[%c1_51, %c0_52, %c0_53] : memref<2x8x1xf32, #tpu.memory_space<vmem>>, vector<1x8x1xf32>
      %98 = vector.shape_cast %97 : vector<1x8x1xf32> to vector<8x1xf32>
      %99 = vector.shape_cast %98 : vector<8x1xf32> to vector<1x8x1xf32>
      %cst_54 = arith.constant dense<0.000000e+00> : vector<1xf32>
      %100 = vector.multi_reduction <add>, %99, %cst_54 [1, 2] : vector<1x8x1xf32> to vector<1xf32>
      %101 = vector.shape_cast %100 : vector<1xf32> to vector<1x1x1xf32>
      %102 = vector.extract %101[0, 0, 0] : f32 from vector<1x1x1xf32>
      %c2 = arith.constant 2 : index
      %103 = memref.load %arg4[%c2] : memref<8xf32, #tpu.memory_space<smem>>
      memref.store %102, %arg4[%c2] : memref<8xf32, #tpu.memory_space<smem>>
      %cst_55 = arith.constant 0.000000e+00 : f32
      %c3 = arith.constant 3 : index
      %104 = memref.load %arg4[%c3] : memref<8xf32, #tpu.memory_space<smem>>
      memref.store %cst_55, %arg4[%c3] : memref<8xf32, #tpu.memory_space<smem>>
      %cst_56 = arith.constant 0.000000e+00 : f32
      %c4 = arith.constant 4 : index
      %105 = memref.load %arg4[%c4] : memref<8xf32, #tpu.memory_space<smem>>
      memref.store %cst_56, %arg4[%c4] : memref<8xf32, #tpu.memory_space<smem>>
      %cst_57 = arith.constant 0.000000e+00 : f32
      %c5 = arith.constant 5 : index
      %106 = memref.load %arg4[%c5] : memref<8xf32, #tpu.memory_space<smem>>
      memref.store %cst_57, %arg4[%c5] : memref<8xf32, #tpu.memory_space<smem>>
      %cst_58 = arith.constant 0.000000e+00 : f32
      %c6 = arith.constant 6 : index
      %107 = memref.load %arg4[%c6] : memref<8xf32, #tpu.memory_space<smem>>
      memref.store %cst_58, %arg4[%c6] : memref<8xf32, #tpu.memory_space<smem>>
      %cst_59 = arith.constant 0.000000e+00 : f32
      %c7 = arith.constant 7 : index
      %108 = memref.load %arg4[%c7] : memref<8xf32, #tpu.memory_space<smem>>
      memref.store %cst_59, %arg4[%c7] : memref<8xf32, #tpu.memory_space<smem>>
    } else {
    }
    return
  }
  func.func @transform_1(%arg0: i32, %arg1: memref<4xi32, #tpu.memory_space<smem>>) -> (i32, i32) {
    %c0_i32 = arith.constant 0 : i32
    %c0_i32_0 = arith.constant 0 : i32
    return %arg0, %c0_i32 : i32, i32
  }
  func.func @transform_2(%arg0: i32, %arg1: memref<4xi32, #tpu.memory_space<smem>>) -> i32 {
    %c0_i32 = arith.constant 0 : i32
    %c0_i32_0 = arith.constant 0 : i32
    return %c0_i32 : i32
  }
}

</mosaic_0001>

<bundles_post_ra>
// kernel: tpu_custom_call.1
= control target key start
LH: loop header
LB: loop body
LE: loop exit
PB: predicated region body
PF: predicated region fallthrough
CT: control target
= control target key end

     0   :  { %s1356_s0 = inlined_call_operand.hbm [shape: s32[4], index: 0, kind: input, shape index: {}]   ;;  %s1357_s1 = inlined_call_operand.hbm [shape: f32[16,256], index: 1, kind: input, shape index: {}]   ;;  %s1358_s2 = inlined_call_operand.hbm [shape: f32[8,256], index: 2, kind: input, shape index: {}]   ;;  %s1359_s3 = inlined_call_operand.hbm [shape: f32[8], index: 3, kind: output, shape index: {}]  }
   0x1   :  { %s833_s14 = scalar_lea.hbm %s1356_s0, 16 }
   0x2   :  { %p834_p0 = scmp.ne.s32.totalorder %s1356_s0, %s833_s14  ;;  %p837_p1 = scmp.lt.u32.totalorder %s833_s14, %s1356_s0 }
   0x4   :  { %p839_p2 = pnand %p837_p1, %p834_p0 }
   0x6   :  { %842 = shalt.err (!%p839_p2)  }
   0x7   :  { %s1075_s19 = smov [#allocation7]  }
   0x8   :  { %9 = dma.hbm_to_smem %s1356_s0, 16, %s1075_s19, [#allocation6] }
   0x9   :  { %1067 = dma.done.wait [#allocation6], 16 }
   0xa   :  { %1068 = vsyncadd [#allocation6], 4294967280 }
   0xb   :  { %11 = sfence }
   0xc   :  { %12 = vsyncpa [#allocation9], 0 }
   0xd   :  { %13 = vsyncpa [#allocation10], 0  ;;  %s1076_s22 = smov [#allocation8]   ;;  %s843_s26 = scalar_lea.hbm %s1358_s2, 256 }
   0xe   :  { %s20_s23 = sshll.u32 %s1076_s22, 4  ;;  %p844_p3 = scmp.ne.s32.totalorder %s1358_s2, %s843_s26  ;;  %s21_s23 = int_to_ptr.vmem [resolvable:$true] %s20_s23 }
   0xf   :  { %p847_p4 = scmp.lt.u32.totalorder %s843_s26, %s1358_s2 }
  0x11   :  { %p849_p5 = pnand %p847_p4, %p844_p3 }
  0x13   :  { %852 = shalt.err (!%p849_p5)
}
  0x14   :  { %s853_s0 = scalar_lea.vmem %s21_s23, 256  ;;  %p858_p7 = scmp.lt.s32.totalorder %s21_s23, %s21_s23 }
  0x15   :  { %p854_p6 = scmp.ne.s32.totalorder %s21_s23, %s853_s0  ;;  %p859_p8 = scmp.lt.s32.totalorder %s853_s0, %s853_s0 }
  0x17   :  { %p860_p9 = por %p859_p8, %p858_p7 }
  0x19   :  { %p861_p10 = pnand %p860_p9, %p854_p6 }
  0x1b   :  { %864 = shalt.err (!%p861_p10)
}
  0x1c   :  { %23 = dma.hbm_to_vmem [thread:$0]  %s1358_s2, 256, %s21_s23, [#allocation9]  }
  0x1d   :  { %1069 = dma.done.wait [#allocation9], 256  }
  0x1e   :  { %1070 = vsyncadd [#allocation9], 4294967040  ;;  %vm41_vm0 = vcmask 7168   ;;  %s44_s6 = sld [smem:[#allocation7]]  ;;  %s1077_s7 = smov [#allocation2]   ;;  %v1078_v0 = vmov 0.0  }
  0x1f   :  { %s56_s8 = sshll.u32 %s1077_s7, 4  ;;  %42 = vst.msk [vmem:[#allocation5] sm:$0xff] %vm41_vm0, %v1078_v0  ;;  %43 = vst.msk [vmem:[#allocation5 + $0x8] sm:$0xff] %vm41_vm0, %v1078_v0  ;;  %s1138_s9 = sld [smem:[#allocation7 + $0x1]]  ;;  %s1140_s8 = int_to_ptr.vmem [resolvable:$true] %s56_s8 }
  0x20   :  { %s1079_s2 = smov [#allocation2 + $0x1]   ;;  %s1142_s11 = sld [smem:[#allocation7 + $0x2]] }
  0x21   :  { %s74_s10 = sshll.u32 %s1079_s2, 4  ;;  %s1080_s12 = smov [#allocation2 + $0x2]   ;;  %s1144_s10 = int_to_ptr.vmem [resolvable:$true] %s74_s10 }
  0x22   :  { %s92_s13 = sshll.u32 %s1080_s12, 4  ;;  %s1147_s14 = sld [smem:[#allocation7 + $0x3]]  ;;  %s1152_s13 = int_to_ptr.vmem [resolvable:$true] %s92_s13 }
  0x23   :  { %s1162_s27 = scalar_lea.hbm %s1357_s1, 512 }
  0x24   :  { %p45_p11 = scmp.gt.s32.totalorder %s44_s6, 0  ;;  %p643_p12 = scmp.lt.s32.totalorder %s44_s6, 3 }
  0x25   :  { %p61_p13 = scmp.gt.s32.totalorder %s1138_s9, 0  ;;  %p651_p0 = scmp.lt.s32.totalorder %s1138_s9, 3 }
  0x26   :  { %s1363_s6 = smov (!%p45_p11, %s44_s6), 0  ;;  %p79_p1 = scmp.gt.s32.totalorder %s1142_s11, 0 }
  0x27   :  { %s1365_s6 = smov (!%p643_p12, %s1363_s6), 3 }
  0x28   :  { %s1150_s15 = scalar_select %p61_p13, %s1138_s9, 0 }
  0x29   :  { %s49_s16 = sshrl.u32 %s1365_s6, 3  ;;  %s50_s17 = sand.u32 7, %s1365_s6  }
  0x2a   :  { %s648_s18 = sshll.u32 %s49_s16, 4 }
  0x2b   :  { %s52_s19 = sadd.s32 %s648_s18, %s50_s17 }
  0x2c   :  { %s649_s20 = sshll.u32 %s52_s19, 4 }
  0x2d   :  { %s54_s23 = scalar_lea.hbm %s1357_s1, %s649_s20 }
  0x2e   :  { %s865_s24 = scalar_lea.hbm %s54_s23, 32  ;;  %p868_p3 = scmp.lt.u32.totalorder %s54_s23, %s1357_s1 }
  0x2f   :  { %p866_p2 = scmp.ne.s32.totalorder %s54_s23, %s865_s24  ;;  %p869_p4 = scmp.lt.u32.totalorder %s1162_s27, %s865_s24 }
  0x30   :  { %p871_p6 = scmp.lt.u32.totalorder %s865_s24, %s54_s23 }
  0x31   :  { %p870_p5 = por %p869_p4, %p868_p3 }
  0x33   :  { %p872_p7 = por %p871_p6, %p870_p5 }
  0x35   :  { %p873_p8 = pnand %p872_p7, %p866_p2 }
  0x37   :  { %876 = shalt.err (!%p873_p8)  }
  0x38   :  { %s877_s30 = scalar_lea.vmem %s1140_s8, 32  ;;  %s1171_s0 = scalar_lea.vmem %s1140_s8, 512 }
  0x39   :  { %p878_p9 = scmp.ne.s32.totalorder %s1140_s8, %s877_s30  ;;  %p882_p10 = scmp.lt.s32.totalorder %s1140_s8, %s1140_s8 }
  0x3a   :  { %p883_p11 = scmp.lt.s32.totalorder %s1171_s0, %s877_s30 }
  0x3c   :  { %p884_p12 = por %p883_p11, %p882_p10 }
  0x3e   :  { %p885_p13 = pnand %p884_p12, %p878_p9 }
  0x40   :  { %888 = shalt.err (!%p885_p13)  }
  0x41   :  { %s1081_s4 = smov 128   ;;  %s1082_s5 = smov 1  }
  0x42   :  { %59 = dma.hbm_to_vmem [thread:$0]  %s54_s23, 32, %s1140_s8, [#allocation3], %s1081_s4, %s1081_s4, %s1082_s5 }
  0x43   :  { %s1367_s15 = smov (!%p651_p0, %s1150_s15), 3  ;;  %p659_p2 = scmp.lt.s32.totalorder %s1142_s11, 3 }
  0x44   :  { %s1186_s6 = scalar_select %p79_p1, %s1142_s11, 0 }
  0x45   :  { %s65_s7 = sadd.s32 4, %s1367_s15  ;;  %p97_p3 = scmp.gt.s32.totalorder %s1147_s14, 0 }
  0x46   :  { %s66_s2 = sshrl.u32 %s65_s7, 3  ;;  %s67_s12 = sand.u32 7, %s65_s7  }
  0x47   :  { %s656_s16 = sshll.u32 %s66_s2, 4  ;;  %s1083_s19 = smov [#allocation2 + $0x3]  }
  0x48   :  { %s69_s17 = sadd.s32 %s656_s16, %s67_s12  ;;  %s110_s20 = sshll.u32 %s1083_s19, 4  ;;  %s1215_s20 = int_to_ptr.vmem [resolvable:$true] %s110_s20 }
  0x49   :  { %s657_s18 = sshll.u32 %s69_s17, 4 }
  0x4a   :  { %s71_s9 = scalar_lea.hbm %s1357_s1, %s657_s18 }
  0x4b   :  { %s889_s23 = scalar_lea.hbm %s71_s9, 32  ;;  %p892_p1 = scmp.lt.u32.totalorder %s71_s9, %s1357_s1 }
  0x4c   :  { %p890_p0 = scmp.ne.s32.totalorder %s71_s9, %s889_s23  ;;  %p893_p5 = scmp.lt.u32.totalorder %s1162_s27, %s889_s23 }
  0x4d   :  { %p895_p7 = scmp.lt.u32.totalorder %s889_s23, %s71_s9 }
  0x4e   :  { %p894_p6 = por %p893_p5, %p892_p1 }
  0x50   :  { %p896_p8 = por %p895_p7, %p894_p6 }
  0x52   :  { %p897_p9 = pnand %p896_p8, %p890_p0 }
  0x54   :  { %900 = shalt.err (!%p897_p9)  }
  0x55   :  { %s901_s15 = scalar_lea.vmem %s1144_s10, 32  ;;  %p906_p11 = scmp.lt.s32.totalorder %s1144_s10, %s1140_s8 }
  0x56   :  { %p902_p10 = scmp.ne.s32.totalorder %s1144_s10, %s901_s15  ;;  %p907_p12 = scmp.lt.s32.totalorder %s1171_s0, %s901_s15 }
  0x58   :  { %p908_p13 = por %p907_p12, %p906_p11 }
  0x5a   :  { %p909_p4 = pnand %p908_p13, %p902_p10 }
  0x5c   :  { %912 = shalt.err (!%p909_p4)  }
  0x5d   :  { %77 = dma.hbm_to_vmem [thread:$0]  %s71_s9, 32, %s1144_s10, [#allocation3], %s1081_s4, %s1081_s4, %s1082_s5 }
  0x5e   :  { %s1369_s6 = smov (!%p659_p2, %s1186_s6), 3  ;;  %s1084_s29 = smov [#allocation2 + $0x4]  }
  0x5f   :  { %s1213_s26 = scalar_select %p97_p3, %s1147_s14, 0 }
  0x60   :  { %s83_s28 = sadd.s32 8, %s1369_s6  ;;  %s128_s30 = sshll.u32 %s1084_s29, 4  ;;  %s1217_s30 = int_to_ptr.vmem [resolvable:$true] %s128_s30 }
  0x61   :  { %s84_s7 = sshrl.u32 %s83_s28, 3  ;;  %s85_s2 = sand.u32 7, %s83_s28  }
  0x62   :  { %s664_s12 = sshll.u32 %s84_s7, 4 }
  0x63   :  { %s87_s16 = sadd.s32 %s664_s12, %s85_s2 }
  0x64   :  { %s665_s17 = sshll.u32 %s87_s16, 4 }
  0x65   :  { %s89_s11 = scalar_lea.hbm %s1357_s1, %s665_s17 }
  0x66   :  { %s913_s19 = scalar_lea.hbm %s89_s11, 32  ;;  %p916_p3 = scmp.lt.u32.totalorder %s89_s11, %s1357_s1 }
  0x67   :  { %p914_p2 = scmp.ne.s32.totalorder %s89_s11, %s913_s19  ;;  %p917_p4 = scmp.lt.u32.totalorder %s1162_s27, %s913_s19 }
  0x68   :  { %p919_p1 = scmp.lt.u32.totalorder %s913_s19, %s89_s11 }
  0x69   :  { %p918_p0 = por %p917_p4, %p916_p3 }
  0x6b   :  { %p920_p5 = por %p919_p1, %p918_p0 }
  0x6d   :  { %p921_p6 = pnand %p920_p5, %p914_p2 }
  0x6f   :  { %924 = shalt.err (!%p921_p6)  }
  0x70   :  { %s925_s6 = scalar_lea.vmem %s1152_s13, 32  ;;  %p930_p8 = scmp.lt.s32.totalorder %s1152_s13, %s1140_s8 }
  0x71   :  { %p926_p7 = scmp.ne.s32.totalorder %s1152_s13, %s925_s6  ;;  %p931_p9 = scmp.lt.s32.totalorder %s1171_s0, %s925_s6 }
  0x73   :  { %p932_p10 = por %p931_p9, %p930_p8 }
  0x75   :  { %p933_p11 = pnand %p932_p10, %p926_p7 }
  0x77   :  { %936 = shalt.err (!%p933_p11)  }
  0x78   :  { %95 = dma.hbm_to_vmem [thread:$0]  %s89_s11, 32, %s1152_s13, [#allocation3], %s1081_s4, %s1081_s4, %s1082_s5 }
  0x79   :  { %p1360_p12 = scmp.lt.s32.totalorder %s1147_s14, 3  ;;  %s1085_s9 = smov [#allocation2 + $0x5]  }
  0x7a   :  { %s146_s23 = sshll.u32 %s1085_s9, 4  ;;  %s1086_s25 = smov [#allocation2 + $0x6]   ;;  %s1238_s23 = int_to_ptr.vmem [resolvable:$true] %s146_s23 }
  0x7b   :  { %s1371_s26 = smov (!%p1360_p12, %s1213_s26), 3  ;;  %s164_s15 = sshll.u32 %s1086_s25, 4  ;;  %s1240_s15 = int_to_ptr.vmem [resolvable:$true] %s164_s15 }
  0x7c   :  { %s101_s24 = sadd.s32 12, %s1371_s26  ;;  %s1087_s2 = smov [#allocation2 + $0x7]  }
  0x7d   :  { %s102_s28 = sshrl.u32 %s101_s24, 3  ;;  %s103_s29 = sand.u32 7, %s101_s24  }
  0x7e   :  { %s672_s7 = sshll.u32 %s102_s28, 4  ;;  %s182_s12 = sshll.u32 %s1087_s2, 4  ;;  %s1247_s12 = int_to_ptr.vmem [resolvable:$true] %s182_s12 }
  0x7f   :  { %s105_s16 = sadd.s32 %s672_s7, %s103_s29 }
  0x80   :  { %s673_s17 = sshll.u32 %s105_s16, 4 }
  0x81   :  { %s1245_s18 = scalar_lea.hbm %s1357_s1, %s673_s17 }
  0x82   :  { %s937_s26 = scalar_lea.hbm %s1245_s18, 32  ;;  %p940_p2 = scmp.lt.u32.totalorder %s1245_s18, %s1357_s1 }
  0x83   :  { %p938_p13 = scmp.ne.s32.totalorder %s1245_s18, %s937_s26  ;;  %p941_p3 = scmp.lt.u32.totalorder %s1162_s27, %s937_s26 }
  0x84   :  { %p943_p0 = scmp.lt.u32.totalorder %s937_s26, %s1245_s18 }
  0x85   :  { %p942_p4 = por %p941_p3, %p940_p2 }
  0x87   :  { %p944_p1 = por %p943_p0, %p942_p4 }
  0x89   :  { %p1257_p5 = pnand %p944_p1, %p938_p13 }
  0x8b   :  { %948 = shalt.err (!%p1257_p5)  }
  0x8c   :  { %s949_s21 = scalar_lea.vmem %s1215_s20, 32  ;;  %p954_p7 = scmp.lt.s32.totalorder %s1215_s20, %s1140_s8 }
  0x8d   :  { %p950_p6 = scmp.ne.s32.totalorder %s1215_s20, %s949_s21  ;;  %p955_p8 = scmp.lt.s32.totalorder %s1171_s0, %s949_s21 }
  0x8f   :  { %p956_p9 = por %p955_p8, %p954_p7 }
  0x91   :  { %p957_p10 = pnand %p956_p9, %p950_p6 }
  0x93   :  { %960 = shalt.err (!%p957_p10)  }
  0x94   :  { %113 = dma.hbm_to_vmem [thread:$0]  %s1245_s18, 32, %s1215_s20, [#allocation3], %s1081_s4, %s1081_s4, %s1082_s5 }
  0x95   :  { %972 = shalt.err (!%p1257_p5)  }
  0x96   :  { %s973_s1 = scalar_lea.vmem %s1217_s30, 32  ;;  %p978_p12 = scmp.lt.s32.totalorder %s1217_s30, %s1140_s8 }
  0x97   :  { %p974_p11 = scmp.ne.s32.totalorder %s1217_s30, %s973_s1  ;;  %p979_p13 = scmp.lt.s32.totalorder %s1171_s0, %s973_s1 }
  0x99   :  { %p980_p2 = por %p979_p13, %p978_p12 }
  0x9b   :  { %p981_p3 = pnand %p980_p2, %p974_p11 }
  0x9d   :  { %984 = shalt.err (!%p981_p3)  }
  0x9e   :  { %131 = dma.hbm_to_vmem [thread:$0]  %s1245_s18, 32, %s1217_s30, [#allocation3], %s1081_s4, %s1081_s4, %s1082_s5 }
  0x9f   :  { %996 = shalt.err (!%p1257_p5)  }
  0xa0   :  { %s997_s27 = scalar_lea.vmem %s1238_s23, 32  ;;  %p1002_p0 = scmp.lt.s32.totalorder %s1238_s23, %s1140_s8 }
  0xa1   :  { %p998_p4 = scmp.ne.s32.totalorder %s1238_s23, %s997_s27  ;;  %p1003_p1 = scmp.lt.s32.totalorder %s1171_s0, %s997_s27 }
  0xa3   :  { %p1004_p6 = por %p1003_p1, %p1002_p0 }
  0xa5   :  { %p1005_p7 = pnand %p1004_p6, %p998_p4 }
  0xa7   :  { %1008 = shalt.err (!%p1005_p7)  }
  0xa8   :  { %149 = dma.hbm_to_vmem [thread:$0]  %s1245_s18, 32, %s1238_s23, [#allocation3], %s1081_s4, %s1081_s4, %s1082_s5 }
  0xa9   :  { %1020 = shalt.err (!%p1257_p5)  }
  0xaa   :  { %s1021_s20 = scalar_lea.vmem %s1240_s15, 32  ;;  %p1026_p9 = scmp.lt.s32.totalorder %s1240_s15, %s1140_s8 }
  0xab   :  { %p1022_p8 = scmp.ne.s32.totalorder %s1240_s15, %s1021_s20  ;;  %p1027_p10 = scmp.lt.s32.totalorder %s1171_s0, %s1021_s20 }
  0xad   :  { %p1028_p11 = por %p1027_p10, %p1026_p9 }
  0xaf   :  { %p1029_p12 = pnand %p1028_p11, %p1022_p8 }
  0xb1   :  { %1032 = shalt.err (!%p1029_p12)  }
  0xb2   :  { %167 = dma.hbm_to_vmem [thread:$0]  %s1245_s18, 32, %s1240_s15, [#allocation3], %s1081_s4, %s1081_s4, %s1082_s5 }
  0xb3   :  { %1044 = shalt.err (!%p1257_p5)  }
  0xb4   :  { %s1045_s30 = scalar_lea.vmem %s1247_s12, 32  ;;  %p1050_p2 = scmp.lt.s32.totalorder %s1247_s12, %s1140_s8 }
  0xb5   :  { %p1046_p13 = scmp.ne.s32.totalorder %s1247_s12, %s1045_s30  ;;  %p1051_p3 = scmp.lt.s32.totalorder %s1171_s0, %s1045_s30 }
  0xb7   :  { %p1052_p4 = por %p1051_p3, %p1050_p2 }
  0xb9   :  { %p1053_p0 = pnand %p1052_p4, %p1046_p13 }
  0xbb   :  { %1056 = shalt.err (!%p1053_p0)  }
  0xbc   :  { %185 = dma.hbm_to_vmem [thread:$0]  %s1245_s18, 32, %s1247_s12, [#allocation3], %s1081_s4, %s1081_s4, %s1082_s5 }
  0xbd   :  { %1071 = dma.done.wait [#allocation3], 256 }
  0xbe   :  { %1072 = vsyncadd [#allocation3], 4294967040  ;;  %v389_v1 = vlaneseq  ;;  %v385_v3 = vld [vmem:[#allocation2] sm:$0xff]  ;;  %v386_v4 = vld [vmem:[#allocation2 + $0x8] sm:$0xff]  ;;  %s1088_s8 = smov 0.0   ;;  %s1057_s9 = scalar_lea.hbm %s1359_s3, 16 }
  0xbf   :  { %v387_v5 = vld [vmem:[#allocation8] sm:$0xff]  ;;  %v388_v6 = vld [vmem:[#allocation8 + $0x8] sm:$0xff]  ;;  %v409_v7 = vand.u32 2147483647, %v386_v4  ;;  %vm438_vm3 = vcmp.gt.f32.partialorder %v385_v3, 0.0  ;;  %vm439_vm4 = vcmp.gt.f32.partialorder %v386_v4, 0.0  ;;  %p1058_p5 = scmp.ne.s32.totalorder %s1359_s3, %s1057_s9  ;;  %p1061_p1 = scmp.lt.u32.totalorder %s1057_s9, %s1359_s3 }
  0xc0   :  { %v1321_v2 = vshrl.u32 %v389_v1, 7  ;;  %vm436_vm2 = vcmp.gt.f32.partialorder %v387_v5, 0.5  ;;  %vm437_vm5 = vcmp.gt.f32.partialorder %v388_v6, 0.5  ;;  %v408_v8 = vand.u32 2147483647, %v385_v3  ;;  %v454_v48 = vld [vmem:[#allocation5] sm:$0xff] }
  0xc1   :  { %vm440_vm6 = vmxor %vm438_vm3, %vm436_vm2  ;;  %v411_v9 = vsub.f32 0.0, %v409_v7  ;;  %v405_v26 = vmul.f32 %v388_v6, %v386_v4  ;;  %v403_v27 = vmax.f32 %v386_v4, 0.0  ;;  %v404_v30 = vmul.f32 %v387_v5, %v385_v3  ;;  %v464_v51 = vld [vmem:[#allocation5 + $0x8] sm:$0xff]  ;;  %516 = sst [smem:[#allocation11 + $0x3]] %s1088_s8  ;;  %p1063_p6 = pnand %p1061_p1, %p1058_p5 }
  0xc2   :  { %vm397_vm1 = vcmp.lt.s32.totalorder %v1321_v2, 4  ;;  %vm441_vm7 = vmxor %vm439_vm4, %vm437_vm5  ;;  %v410_v10 = vsub.f32 0.0, %v408_v8  ;;  %v402_v31 = vmax.f32 %v385_v3, 0.0  ;;  %518 = sst [smem:[#allocation11 + $0x4]] %s1088_s8 }
  0xc3   :  { %vm442_vm8 = vmand %vm440_vm6, %vm397_vm1  ;;  %v414_v11 = vmul.f32 1.442695, %v411_v9  ;;  %v407_v35 = vsub.f32 %v403_v27, %v405_v26  ;;  %520 = sst [smem:[#allocation11 + $0x5]] %s1088_s8 }
  0xc4   :  { %vm443_vm9 = vmand %vm441_vm7, %vm397_vm1  ;;  %v455_v12 = vsel %vm442_vm8, 1.0, %v1078_v0  ;;  %v412_v14 = vmul.f32 1.442695, %v410_v10  ;;  %v406_v38 = vsub.f32 %v402_v31, %v404_v30  ;;  %522 = sst [smem:[#allocation11 + $0x6]] %s1088_s8 }
  0xc5   :  { %v456_v13 = vsel %vm443_vm9, 1.0, %v1078_v0  ;;  %vm444_vm10 = vmand %vm442_vm8, %vm436_vm2  ;;  %825 = vpow2.f32 %v414_v11  ;;  %524 = sst [smem:[#allocation11 + $0x7]] %s1088_s8 }
  0xc6   :  { %v457_v15 = vadd.f32 %v456_v13, %v455_v12  ;;  %vm445_vm11 = vmand %vm443_vm9, %vm437_vm5  ;;  %v465_v16 = vsel %vm444_vm10, 1.0, %v1078_v0  ;;  %827 = vpow2.f32 %v412_v14 }
  0xc7   :  { %v466_v17 = vsel %vm445_vm11, 1.0, %v1078_v0 }
  0xc8   :  { %458 = vadd.xlane.f32.xlu0 %v457_v15  ;;  %v467_v18 = vadd.f32 %v466_v17, %v465_v16 }
  0xcc   :  { %468 = vadd.xlane.f32.xlu0 %v467_v18 }
  0xcf   :  { %v826_v19 = vpop.eup %825 }
  0xd0   :  { %v828_v20 = vpop.eup %827  ;;  %v425_v21 = vadd.f32 1.0, %v826_v19  ;;  %v428_v23 = vmul.f32 -0.5, %v826_v19  ;;  %v431_v29 = vand.u32 2147483647, %v826_v19 }
  0xd1   :  { %v416_v22 = vadd.f32 1.0, %v828_v20  ;;  %v419_v24 = vmul.f32 -0.5, %v828_v20  ;;  %v422_v32 = vand.u32 2147483647, %v828_v20 }
  0xd2   :  { %829 = vlog2.f32 %v425_v21  ;;  %v429_v25 = vadd.f32 1.0, %v428_v23  ;;  %vm432_vm12 = vcmp.lt.f32.partialorder %v431_v29, 0.0004427343 }
  0xd3   :  { %831 = vlog2.f32 %v416_v22  ;;  %v420_v28 = vadd.f32 1.0, %v419_v24  ;;  %vm423_vm13 = vcmp.lt.f32.partialorder %v422_v32, 0.0004427343 }
  0xd4   :  { %v430_v33 = vmul.f32 %v826_v19, %v429_v25 }
  0xd5   :  { %v421_v36 = vmul.f32 %v828_v20, %v420_v28 }
  0xdc   :  { %v830_v34 = vpop.eup %829 }
  0xdd   :  { %v832_v37 = vpop.eup %831  ;;  %v427_v39 = vmul.f32 0.6931472, %v830_v34 }
  0xde   :  { %v418_v40 = vmul.f32 0.6931472, %v832_v37 }
  0xdf   :  { %v433_v41 = vsel %vm432_vm12, %v430_v33, %v427_v39 }
  0xe0   :  { %v424_v42 = vsel %vm423_vm13, %v421_v36, %v418_v40  ;;  %v435_v43 = vadd.f32 %v433_v41, %v407_v35 }
  0xe1   :  { %v434_v44 = vadd.f32 %v424_v42, %v406_v38 }
  0xe2   :  { %v449_v45 = vsel %vm397_vm1, %v435_v43, 0.0 }
  0xe3   :  { %v448_v46 = vsel %vm397_vm1, %v434_v44, 0.0 }
  0xe4   :  { %v477_v47 = vadd.f32 %v449_v45, %v448_v46 }
  0xe6   :  { %478 = vadd.xlane.f32.xlu1 %v477_v47 }
 0x155   :  { %v459_v49 = vpop.xlane.xlu0 %458 }
 0x156   :  { %v460_v50 = vadd.f32 %v459_v49, %v454_v48 }
 0x158   :  { %462 = vst.msk [vmem:[#allocation5] sm:$0xff] %vm41_vm0, %v460_v50 }
 0x159   :  { %v469_v52 = vpop.xlane.xlu0 %468 }
 0x15a   :  { %v470_v53 = vadd.f32 %v469_v52, %v464_v51 }
 0x15c   :  { %471 = vst.msk [vmem:[#allocation5 + $0x8] sm:$0xff] %vm41_vm0, %v470_v53 }
 0x15f   :  { %v489_v54 = vld [vmem:[#allocation5] sm:$0xff] }
 0x160   :  { %v490_v55 = vsel %vm41_vm0, %v489_v54, 0.0 }
 0x161   :  { %491 = vadd.xlane.f32.xlu1 %v490_v55 }
 0x163   :  { %v502_v56 = vld [vmem:[#allocation5 + $0x8] sm:$0xff] }
 0x164   :  { %v503_v57 = vsel %vm41_vm0, %v502_v56, 0.0 }
 0x165   :  { %504 = vadd.xlane.f32.xlu0 %v503_v57 }
 0x173   :  { %v479_v58 = vpop.xlane.xlu1 %478 }
 0x174   :  { %v480_v59 = vrot.slane %v479_v58, 4 }
 0x176   :  { %v481_v60 = vadd.f32 %v480_v59, %v479_v58 }
 0x178   :  { %v482_v61 = vrot.slane %v481_v60, 2 }
 0x17a   :  { %v483_v62 = vadd.f32 %v482_v61, %v481_v60 }
 0x17c   :  { %v484_v63 = vrot.slane %v483_v62, 1 }
 0x17e   :  { %v485_v0 = vadd.f32 %v484_v63, %v483_v62 }
 0x180   :  { %804 = vpush %v485_v0 }
 0x1b1   :  { %s805_s0 = spop %804 }
 0x1b2   :  { %488 = sst [smem:[#allocation11]] %s805_s0 }
 0x1ee   :  { %v492_v1 = vpop.xlane.xlu1 %491 }
 0x1ef   :  { %v493_v2 = vrot.slane %v492_v1, 4 }
 0x1f1   :  { %v494_v3 = vadd.f32 %v493_v2, %v492_v1 }
 0x1f2   :  { %v505_v4 = vpop.xlane.xlu0 %504 }
 0x1f3   :  { %v495_v5 = vrot.slane %v494_v3, 2  ;;  %v506_v6 = vrot.slane %v505_v4, 4 }
 0x1f5   :  { %v496_v7 = vadd.f32 %v495_v5, %v494_v3  ;;  %v507_v8 = vadd.f32 %v506_v6, %v505_v4 }
 0x1f7   :  { %v508_v9 = vrot.slane %v507_v8, 2  ;;  %v497_v10 = vrot.slane %v496_v7, 1 }
 0x1f9   :  { %v509_v11 = vadd.f32 %v508_v9, %v507_v8  ;;  %v498_v12 = vadd.f32 %v497_v10, %v496_v7 }
 0x1fb   :  { %806 = vpush %v498_v12  ;;  %v510_v13 = vrot.slane %v509_v11, 1 }
 0x1fd   :  { %v511_v14 = vadd.f32 %v510_v13, %v509_v11 }
 0x1ff   :  { %808 = vpush %v511_v14 }
 0x22c   :  { %s807_s4 = spop %806 }
 0x22d   :  { %501 = sst [smem:[#allocation11 + $0x1]] %s807_s4 }
 0x230   :  { %s809_s5 = spop %808 }
 0x231   :  { %514 = sst [smem:[#allocation11 + $0x2]] %s809_s5 }
 0x232   :  { %1066 = shalt.err (!%p1063_p6)
}
 0x233   :  { %s1089_s28 = smov [#allocation11]  }
 0x234   :  { %532 = dma.smem_to_hbm %s1089_s28, 16, %s1359_s3, [#allocation10]  }
 0x235   :  { %1073 = dma.done.wait [#allocation10], 16  }
 0x236   :  { %1074 = vsyncadd [#allocation10], 4294967280 }
 0x237   :  { %536 = sfence }
 0x238   :  { %537 = vsyncpa [#allocation9], 1 }
 0x239   :  { %538 = vsyncpa [#allocation10], 1 }
 0x23a   :  { %539 = vsyncmov [#allocation3] }
 0x23d   :  { %s540_s2 = vpop.sfrf %539 }
 0x23e   :  { %p770_p7 = scmp.ne.s32.totalorder %s540_s2, 0 }
 0x240   :  { %544 = shalt.err (%p770_p7)  }
 0x241   :  { %546 = vsyncmov [#allocation3 + $0x1] }
 0x244   :  { %s547_s12 = vpop.sfrf %546 }
 0x245   :  { %p771_p8 = scmp.ne.s32.totalorder %s547_s12, 0 }
 0x247   :  { %551 = shalt.err (%p771_p8)  }

</bundles_post_ra>
